<compile_context>
chip_gen: v7x
topology: tpu7x:2x2x1
jax: 0.10.0
libtpu: 0.0.40
codegen_flags: <defaults>
</compile_context>

<pallas_src>
import functools

import jax
import jax.numpy as jnp
from jax import lax
from jax.experimental import pallas as pl
from jax.experimental.pallas import tpu as pltpu

LEAKY_SLOPE = 0.01
BN_EPS = 1e-5


# ----------------------------------------------------------------------------- kernels
def _conv3x3_tap_matmuls(xp_ref, w_ref, h0, th, W, N):
    """Accumulate the nine 3x3 taps for output rows [h0, h0+th) as
    (th*W, Cin) x (Cin, N) MXU matmuls.

    xp_ref: (1, H+2, W+2, Cin) padded input tile;  w_ref: (3, 3, Cin, N)."""
    Cin = xp_ref.shape[-1]
    acc = jnp.zeros((th * W, N), jnp.float32)
    for i in range(3):
        for j in range(3):
            lhs = xp_ref[0, h0 + i:h0 + i + th, j:j + W, :].reshape(th * W, Cin)
            acc += jnp.dot(lhs, w_ref[i, j], preferred_element_type=jnp.float32)
    return acc


def _fused_conv_bn_act_kernel(xp_ref, w_ref, c_ref, o_ref, *, H, W, TH):
    """All eight sub-convs as one 3x3 valid conv + per-channel affine +
    selective LeakyReLU (branch-1 channels only; branch-2 slope = 1.0).

    xp_ref: (1, H+2, W+2, Cin)   w_ref: (3, 3, Cin, N)  with N = 8*Cout
    c_ref : (3, N)  rows = [scale, shift, negative_slope]
    o_ref : (1, H, W, N)
    """
    N = o_ref.shape[-1]
    scale = c_ref[0:1, :]
    shift = c_ref[1:2, :]
    nslope = c_ref[2:3, :]
    for h0 in range(0, H, TH):           # static row-chunk loop (bounds vreg pressure)
        th = min(TH, H - h0)
        acc = _conv3x3_tap_matmuls(xp_ref, w_ref, h0, th, W, N)
        y = acc * scale + shift
        y = jnp.where(y >= 0, y, nslope * y)
        o_ref[0, h0:h0 + th] = y.reshape(th, W, N).astype(o_ref.dtype)


def _conv3_bn_add_act_kernel(y1p_ref, w_ref, c_ref, x2_ref, o_ref, *, H, W, TH, slope):
    """conv3 (3x3 on pre-padded y1) + bn2 affine + skip add + LeakyReLU.

    y1p_ref: (1, H+2, W+2, C)   w_ref: (3, 3, C, C)
    c_ref  : (2, C)  rows = [s2, t2']  (conv3 bias folded into t2')
    x2_ref : (1, H, W, C)  (= bn1_2(out2_1234), produced by the first kernel)
    o_ref  : (1, H, W, C)
    """
    C = o_ref.shape[-1]
    s2 = c_ref[0:1, :]
    t2 = c_ref[1:2, :]
    for h0 in range(0, H, TH):
        th = min(TH, H - h0)
        acc = _conv3x3_tap_matmuls(y1p_ref, w_ref, h0, th, W, C)
        y = acc * s2 + t2 + x2_ref[0, h0:h0 + th].reshape(th * W, C)
        y = jnp.where(y >= 0, y, slope * y)
        o_ref[0, h0:h0 + th] = y.reshape(th, W, C).astype(o_ref.dtype)


# ----------------------------------------------------------------------------- wrappers
def _pick_row_tile(H, W, max_m=256):
    """Rows per in-kernel matmul chunk.  The (th, W, C) <-> (th*W, C) reshapes are
    layout-free only when W % 8 == 0; otherwise fall back to one row per chunk."""
    if W % 8 != 0:
        return 1
    th = max(1, min(H, max_m // W))
    while H % th != 0:
        th -= 1
    return th


def fused_conv_bn_act(xp, w, consts):
    """xp: (B, H+2, W+2, Cin) padded NHWC; w: (3, 3, Cin, N); consts: (3, N)."""
    B, Hp, Wp, Cin = xp.shape
    N = w.shape[-1]
    H, W = Hp - 2, Wp - 2
    TH = _pick_row_tile(H, W)
    return pl.pallas_call(
        functools.partial(_fused_conv_bn_act_kernel, H=H, W=W, TH=TH),
        out_shape=jax.ShapeDtypeStruct((B, H, W, N), jnp.float32),
        grid=(B,),
        in_specs=[
            pl.BlockSpec((1, Hp, Wp, Cin), lambda b: (b, 0, 0, 0)),
            pl.BlockSpec((3, 3, Cin, N), lambda b: (0, 0, 0, 0)),
            pl.BlockSpec((3, N), lambda b: (0, 0)),
        ],
        out_specs=pl.BlockSpec((1, H, W, N), lambda b: (b, 0, 0, 0)),
        compiler_params=pltpu.CompilerParams(dimension_semantics=("parallel",)),
    )(xp, w, consts)


def conv3_bn_add_act(y1p, w3, consts, x2, slope):
    """y1p: (B, H+2, W+2, C) padded; x2: (B, H, W, C); consts: (2, C)."""
    B, Hp, Wp, C = y1p.shape
    H, W = Hp - 2, Wp - 2
    TH = _pick_row_tile(H, W)
    return pl.pallas_call(
        functools.partial(_conv3_bn_add_act_kernel, H=H, W=W, TH=TH, slope=slope),
        out_shape=jax.ShapeDtypeStruct((B, H, W, C), jnp.float32),
        grid=(B,),
        in_specs=[
            pl.BlockSpec((1, Hp, Wp, C), lambda b: (b, 0, 0, 0)),
            pl.BlockSpec((3, 3, C, C), lambda b: (0, 0, 0, 0)),
            pl.BlockSpec((2, C), lambda b: (0, 0)),
            pl.BlockSpec((1, H, W, C), lambda b: (b, 0, 0, 0)),
        ],
        out_specs=pl.BlockSpec((1, H, W, C), lambda b: (b, 0, 0, 0)),
        compiler_params=pltpu.CompilerParams(dimension_semantics=("parallel",)),
    )(y1p, w3, consts, x2)


# ----------------------------------------------------------------------------- glue
def _embed_3x3(w):
    """Zero-embed a (kh, kw, Cin, Cout) kernel into 3x3 (pad at top/left) so that,
    applied to the common (1,1,1,1)-padded input, it reproduces the original conv
    with its asymmetric PyTorch padding."""
    kh, kw = w.shape[0], w.shape[1]
    return jnp.pad(w, ((3 - kh, 0), (3 - kw, 0), (0, 0), (0, 0)))


def depth_to_space_2x(y):
    """(B, H, W, 4, C) in sub-pixel order [TL, TR, BL, BR] -> (B, 2H, 2W, C)."""
    B, H, W, _, C = y.shape
    y = y.reshape(B, H, W, 2, 2, C)
    y = jnp.transpose(y, (0, 1, 3, 2, 4, 5))
    return y.reshape(B, 2 * H, 2 * W, C)


def interleave_2x(a, b, c, d):
    """a..d: (B, H, W, C) -> (B, 2H, 2W, C); (2i,2j)=a, (2i,2j+1)=b, (2i+1,2j)=c,
    (2i+1,2j+1)=d (matches the stack/permute/view pixel-shuffle in PyTorch)."""
    B, H, W, C = a.shape
    top = jnp.stack([a, b], axis=3).reshape(B, H, 2 * W, C)
    bot = jnp.stack([c, d], axis=3).reshape(B, H, 2 * W, C)
    return jnp.stack([top, bot], axis=2).reshape(B, 2 * H, 2 * W, C)


def bn_scale_shift(gamma, beta, mean, var, eps=BN_EPS):
    s = gamma / jnp.sqrt(var + eps)
    return s, beta - mean * s


# F.pad(x, (l, r, t, b)) pads W by (l, r) and H by (t, b); NHWC pad specs (H, W):
_PADS = {
    "1": ((1, 1), (1, 1)),  # 3x3 kernel
    "2": ((0, 1), (1, 1)),  # (2,3) kernel
    "3": ((1, 1), (0, 1)),  # (3,2) kernel
    "4": ((0, 1), (0, 1)),  # 2x2 kernel
}


def up_project_forward(x_nchw, p, activate="leaky_relu"):
    slope = 0.0 if activate == "relu" else LEAKY_SLOPE
    x = jnp.transpose(x_nchw, (0, 2, 3, 1))          # -> NHWC
    B, H, W, _ = x.shape
    Cout = p["w1_1"].shape[-1]

    # Fold the 8 sub-convs into one 3x3 weight with 8*Cout output channels, and
    # fold conv bias + BatchNorm (bn1_1 / bn1_2) into a per-channel affine.
    order = [(br, k) for br in ("1", "2") for k in "1234"]
    w_fused = jnp.concatenate([_embed_3x3(p[f"w{br}_{k}"]) for br, k in order], axis=-1)
    b_fused = jnp.concatenate([p[f"b{br}_{k}"].reshape(-1) for br, k in order])

    s11, t11 = bn_scale_shift(p["bn1_1_g"], p["bn1_1_b"], p["bn1_1_m"], p["bn1_1_v"])
    s12, t12 = bn_scale_shift(p["bn1_2_g"], p["bn1_2_b"], p["bn1_2_m"], p["bn1_2_v"])
    s2, t2 = bn_scale_shift(p["bn2_g"], p["bn2_b"], p["bn2_m"], p["bn2_v"])

    scale = jnp.concatenate([jnp.tile(s11, 4), jnp.tile(s12, 4)])
    shift = b_fused * scale + jnp.concatenate([jnp.tile(t11, 4), jnp.tile(t12, 4)])
    nslope = jnp.concatenate([jnp.full((4 * Cout,), slope, jnp.float32),
                              jnp.ones((4 * Cout,), jnp.float32)])   # branch 2: identity
    consts_a = jnp.stack([scale, shift, nslope]).astype(jnp.float32)  # (3, 8*Cout)

    xp = jnp.pad(x, ((0, 0), (1, 1), (1, 1), (0, 0)))                 # single shared pad
    y = fused_conv_bn_act(xp, w_fused, consts_a)                      # (B, H, W, 8*Cout)
    y = y.reshape(B, H, W, 8, Cout)
    y1 = depth_to_space_2x(y[:, :, :, 0:4, :])     # = leaky(bn1_1(out1_1234))
    out2 = depth_to_space_2x(y[:, :, :, 4:8, :])   # = bn1_2(out2_1234)

    consts_b = jnp.stack([s2, p["b3"].reshape(-1) * s2 + t2]).astype(jnp.float32)  # (2, C)
    y1p = jnp.pad(y1, ((0, 0), (1, 1), (1, 1), (0, 0)))               # conv3 padding=1
    out = conv3_bn_add_act(y1p, p["w3"], consts_b, out2, slope)       # conv3+bn2+add+act
    return jnp.transpose(out, (0, 3, 1, 2))        # -> NCHW


# ----------------------------------------------------------------------------- pure-JAX reference
def up_project_reference(x_nchw, p, activate="leaky_relu"):
    slope = 0.0 if activate == "relu" else LEAKY_SLOPE
    x = jnp.transpose(x_nchw, (0, 2, 3, 1))

    def conv(xp, w, b):
        y = lax.conv_general_dilated(xp, w, (1, 1), "VALID",
                                     dimension_numbers=("NHWC", "HWIO", "NHWC"),
                                     precision=lax.Precision.HIGHEST)
        return y + b.reshape(1, 1, 1, -1)

    def padx(ph, pw):
        return jnp.pad(x, ((0, 0), ph, pw, (0, 0)))

    def leaky(v):
        return jnp.where(v >= 0, v, slope * v)

    outs = {}
    for br in ("1", "2"):
        convs = [conv(padx(*_PADS[k]), p[f"w{br}_{k}"], p[f"b{br}_{k}"]) for k in "1234"]
        outs[br] = interleave_2x(*convs)

    s11, t11 = bn_scale_shift(p["bn1_1_g"], p["bn1_1_b"], p["bn1_1_m"], p["bn1_1_v"])
    s12, t12 = bn_scale_shift(p["bn1_2_g"], p["bn1_2_b"], p["bn1_2_m"], p["bn1_2_v"])
    s2, t2 = bn_scale_shift(p["bn2_g"], p["bn2_b"], p["bn2_m"], p["bn2_v"])

    y1 = leaky(outs["1"] * s11.reshape(1, 1, 1, -1) + t11.reshape(1, 1, 1, -1))
    y1p = jnp.pad(y1, ((0, 0), (1, 1), (1, 1), (0, 0)))
    c3 = conv(y1p, p["w3"], p["b3"])
    r1 = c3 * s2.reshape(1, 1, 1, -1) + t2.reshape(1, 1, 1, -1)
    r2 = outs["2"] * s12.reshape(1, 1, 1, -1) + t12.reshape(1, 1, 1, -1)
    out = leaky(r1 + r2)
    return jnp.transpose(out, (0, 3, 1, 2))


# ----------------------------------------------------------------------------- params
def init_params(key, cin, cout):
    ks = {"1": (3, 3), "2": (2, 3), "3": (3, 2), "4": (2, 2)}
    keys = iter(jax.random.split(key, 64))
    p = {}
    for br in ("1", "2"):
        for k, (kh, kw) in ks.items():
            p[f"w{br}_{k}"] = 0.1 * jax.random.normal(next(keys), (kh, kw, cin, cout), jnp.float32)
            p[f"b{br}_{k}"] = 0.1 * jax.random.normal(next(keys), (1, cout), jnp.float32)
    p["w3"] = 0.1 * jax.random.normal(next(keys), (3, 3, cout, cout), jnp.float32)
    p["b3"] = 0.1 * jax.random.normal(next(keys), (1, cout), jnp.float32)
    for bn in ("bn1_1", "bn1_2", "bn2"):
        p[f"{bn}_g"] = 1.0 + 0.1 * jax.random.normal(next(keys), (cout,), jnp.float32)
        p[f"{bn}_b"] = 0.1 * jax.random.normal(next(keys), (cout,), jnp.float32)
        p[f"{bn}_m"] = 0.1 * jax.random.normal(next(keys), (cout,), jnp.float32)
        p[f"{bn}_v"] = 1.0 + 0.5 * jnp.abs(jax.random.normal(next(keys), (cout,), jnp.float32))
    return p


if __name__ == "__main__":
    B, Cin, Cout, H, W = 2, 4, 8, 16, 16
    key = jax.random.PRNGKey(0)
    kx, kp = jax.random.split(key)
    x = jax.random.normal(kx, (B, Cin, H, W), jnp.float32)   # NCHW like the PyTorch module
    params = init_params(kp, Cin, Cout)

    out = up_project_forward(x, params)
    out = jax.block_until_ready(out)
    assert out.shape == (B, Cout, 2 * H, 2 * W), out.shape

    ref = up_project_reference(x, params)
    max_err = float(jnp.max(jnp.abs(out - ref)))
    assert bool(jnp.allclose(out, ref, rtol=2e-2, atol=2e-2)), f"mismatch, max_err={max_err}"

    print("KERNEL_OK")
</pallas_src>

<mosaic_0001>
module attributes {stable_mosaic.version = 11 : i64} {
  func.func @_fused_conv_bn_act_kernel(%arg0: i32, %arg1: memref<1x18x18x4xf32, #tpu.memory_space<vmem>>, %arg2: memref<3x3x4x64xf32, #tpu.memory_space<vmem>>, %arg3: memref<3x64xf32, #tpu.memory_space<vmem>>, %arg4: memref<1x16x16x64xf32, #tpu.memory_space<vmem>>) attributes {dimension_semantics = [#tpu.dimension_semantics<parallel>], iteration_bounds = array<i64: 2>, scalar_prefetch = 0 : i64, scratch_operands = 0 : i64, tpu.core_type = #tpu.core_type<tc>, window_params = [{transform_indices = @transform_0, window_bounds = array<i64: 1, 18, 18, 4>}, {pipeline_mode = #tpu.pipeline_mode<synchronous>, transform_indices = @transform_1, window_bounds = array<i64: 3, 3, 4, 64>}, {pipeline_mode = #tpu.pipeline_mode<synchronous>, transform_indices = @transform_2, window_bounds = array<i64: 3, 64>}, {transform_indices = @transform_3, window_bounds = array<i64: 1, 16, 16, 64>}]} {
    %c0 = arith.constant 0 : index
    %c0_0 = arith.constant 0 : index
    %0 = vector.load %arg3[%c0, %c0_0] : memref<3x64xf32, #tpu.memory_space<vmem>>, vector<1x64xf32>
    %c1 = arith.constant 1 : index
    %c0_1 = arith.constant 0 : index
    %1 = vector.load %arg3[%c1, %c0_1] : memref<3x64xf32, #tpu.memory_space<vmem>>, vector<1x64xf32>
    %c2 = arith.constant 2 : index
    %c0_2 = arith.constant 0 : index
    %2 = vector.load %arg3[%c2, %c0_2] : memref<3x64xf32, #tpu.memory_space<vmem>>, vector<1x64xf32>
    %cst = arith.constant 0.000000e+00 : f32
    %3 = vector.broadcast %cst : f32 to vector<256x64xf32>
    %c0_3 = arith.constant 0 : index
    %c0_4 = arith.constant 0 : index
    %c0_5 = arith.constant 0 : index
    %c0_6 = arith.constant 0 : index
    %4 = vector.load %arg1[%c0_3, %c0_4, %c0_5, %c0_6] : memref<1x18x18x4xf32, #tpu.memory_space<vmem>>, vector<1x16x16x4xf32>
    %5 = vector.shape_cast %4 : vector<1x16x16x4xf32> to vector<16x16x4xf32>
    %6 = vector.shape_cast %5 : vector<16x16x4xf32> to vector<256x4xf32>
    %c0_7 = arith.constant 0 : index
    %c0_8 = arith.constant 0 : index
    %c0_9 = arith.constant 0 : index
    %c0_10 = arith.constant 0 : index
    %7 = vector.load %arg2[%c0_7, %c0_8, %c0_9, %c0_10] : memref<3x3x4x64xf32, #tpu.memory_space<vmem>>, vector<1x1x4x64xf32>
    %8 = vector.shape_cast %7 : vector<1x1x4x64xf32> to vector<4x64xf32>
    %cst_11 = arith.constant dense<0.000000e+00> : vector<256x64xf32>
    %9 = tpu.matmul %6, %8, %cst_11 {dimension_numbers = #tpu.dot_dimension_numbers<[1], [0], [0], [1], [0, 0, 1, 1], [], []>} : vector<256x4xf32>, vector<4x64xf32>, vector<256x64xf32> -> vector<256x64xf32>
    %10 = arith.addf %3, %9 : vector<256x64xf32>
    %c0_12 = arith.constant 0 : index
    %c0_13 = arith.constant 0 : index
    %c1_14 = arith.constant 1 : index
    %c0_15 = arith.constant 0 : index
    %11 = vector.load %arg1[%c0_12, %c0_13, %c1_14, %c0_15] : memref<1x18x18x4xf32, #tpu.memory_space<vmem>>, vector<1x16x16x4xf32>
    %12 = vector.shape_cast %11 : vector<1x16x16x4xf32> to vector<16x16x4xf32>
    %13 = vector.shape_cast %12 : vector<16x16x4xf32> to vector<256x4xf32>
    %c0_16 = arith.constant 0 : index
    %c1_17 = arith.constant 1 : index
    %c0_18 = arith.constant 0 : index
    %c0_19 = arith.constant 0 : index
    %14 = vector.load %arg2[%c0_16, %c1_17, %c0_18, %c0_19] : memref<3x3x4x64xf32, #tpu.memory_space<vmem>>, vector<1x1x4x64xf32>
    %15 = vector.shape_cast %14 : vector<1x1x4x64xf32> to vector<4x64xf32>
    %cst_20 = arith.constant dense<0.000000e+00> : vector<256x64xf32>
    %16 = tpu.matmul %13, %15, %cst_20 {dimension_numbers = #tpu.dot_dimension_numbers<[1], [0], [0], [1], [0, 0, 1, 1], [], []>} : vector<256x4xf32>, vector<4x64xf32>, vector<256x64xf32> -> vector<256x64xf32>
    %17 = arith.addf %10, %16 : vector<256x64xf32>
    %c0_21 = arith.constant 0 : index
    %c0_22 = arith.constant 0 : index
    %c2_23 = arith.constant 2 : index
    %c0_24 = arith.constant 0 : index
    %18 = vector.load %arg1[%c0_21, %c0_22, %c2_23, %c0_24] : memref<1x18x18x4xf32, #tpu.memory_space<vmem>>, vector<1x16x16x4xf32>
    %19 = vector.shape_cast %18 : vector<1x16x16x4xf32> to vector<16x16x4xf32>
    %20 = vector.shape_cast %19 : vector<16x16x4xf32> to vector<256x4xf32>
    %c0_25 = arith.constant 0 : index
    %c2_26 = arith.constant 2 : index
    %c0_27 = arith.constant 0 : index
    %c0_28 = arith.constant 0 : index
    %21 = vector.load %arg2[%c0_25, %c2_26, %c0_27, %c0_28] : memref<3x3x4x64xf32, #tpu.memory_space<vmem>>, vector<1x1x4x64xf32>
    %22 = vector.shape_cast %21 : vector<1x1x4x64xf32> to vector<4x64xf32>
    %cst_29 = arith.constant dense<0.000000e+00> : vector<256x64xf32>
    %23 = tpu.matmul %20, %22, %cst_29 {dimension_numbers = #tpu.dot_dimension_numbers<[1], [0], [0], [1], [0, 0, 1, 1], [], []>} : vector<256x4xf32>, vector<4x64xf32>, vector<256x64xf32> -> vector<256x64xf32>
    %24 = arith.addf %17, %23 : vector<256x64xf32>
    %c0_30 = arith.constant 0 : index
    %c1_31 = arith.constant 1 : index
    %c0_32 = arith.constant 0 : index
    %c0_33 = arith.constant 0 : index
    %25 = vector.load %arg1[%c0_30, %c1_31, %c0_32, %c0_33] : memref<1x18x18x4xf32, #tpu.memory_space<vmem>>, vector<1x16x16x4xf32>
    %26 = vector.shape_cast %25 : vector<1x16x16x4xf32> to vector<16x16x4xf32>
    %27 = vector.shape_cast %26 : vector<16x16x4xf32> to vector<256x4xf32>
    %c1_34 = arith.constant 1 : index
    %c0_35 = arith.constant 0 : index
    %c0_36 = arith.constant 0 : index
    %c0_37 = arith.constant 0 : index
    %28 = vector.load %arg2[%c1_34, %c0_35, %c0_36, %c0_37] : memref<3x3x4x64xf32, #tpu.memory_space<vmem>>, vector<1x1x4x64xf32>
    %29 = vector.shape_cast %28 : vector<1x1x4x64xf32> to vector<4x64xf32>
    %cst_38 = arith.constant dense<0.000000e+00> : vector<256x64xf32>
    %30 = tpu.matmul %27, %29, %cst_38 {dimension_numbers = #tpu.dot_dimension_numbers<[1], [0], [0], [1], [0, 0, 1, 1], [], []>} : vector<256x4xf32>, vector<4x64xf32>, vector<256x64xf32> -> vector<256x64xf32>
    %31 = arith.addf %24, %30 : vector<256x64xf32>
    %c0_39 = arith.constant 0 : index
    %c1_40 = arith.constant 1 : index
    %c1_41 = arith.constant 1 : index
    %c0_42 = arith.constant 0 : index
    %32 = vector.load %arg1[%c0_39, %c1_40, %c1_41, %c0_42] : memref<1x18x18x4xf32, #tpu.memory_space<vmem>>, vector<1x16x16x4xf32>
    %33 = vector.shape_cast %32 : vector<1x16x16x4xf32> to vector<16x16x4xf32>
    %34 = vector.shape_cast %33 : vector<16x16x4xf32> to vector<256x4xf32>
    %c1_43 = arith.constant 1 : index
    %c1_44 = arith.constant 1 : index
    %c0_45 = arith.constant 0 : index
    %c0_46 = arith.constant 0 : index
    %35 = vector.load %arg2[%c1_43, %c1_44, %c0_45, %c0_46] : memref<3x3x4x64xf32, #tpu.memory_space<vmem>>, vector<1x1x4x64xf32>
    %36 = vector.shape_cast %35 : vector<1x1x4x64xf32> to vector<4x64xf32>
    %cst_47 = arith.constant dense<0.000000e+00> : vector<256x64xf32>
    %37 = tpu.matmul %34, %36, %cst_47 {dimension_numbers = #tpu.dot_dimension_numbers<[1], [0], [0], [1], [0, 0, 1, 1], [], []>} : vector<256x4xf32>, vector<4x64xf32>, vector<256x64xf32> -> vector<256x64xf32>
    %38 = arith.addf %31, %37 : vector<256x64xf32>
    %c0_48 = arith.constant 0 : index
    %c1_49 = arith.constant 1 : index
    %c2_50 = arith.constant 2 : index
    %c0_51 = arith.constant 0 : index
    %39 = vector.load %arg1[%c0_48, %c1_49, %c2_50, %c0_51] : memref<1x18x18x4xf32, #tpu.memory_space<vmem>>, vector<1x16x16x4xf32>
    %40 = vector.shape_cast %39 : vector<1x16x16x4xf32> to vector<16x16x4xf32>
    %41 = vector.shape_cast %40 : vector<16x16x4xf32> to vector<256x4xf32>
    %c1_52 = arith.constant 1 : index
    %c2_53 = arith.constant 2 : index
    %c0_54 = arith.constant 0 : index
    %c0_55 = arith.constant 0 : index
    %42 = vector.load %arg2[%c1_52, %c2_53, %c0_54, %c0_55] : memref<3x3x4x64xf32, #tpu.memory_space<vmem>>, vector<1x1x4x64xf32>
    %43 = vector.shape_cast %42 : vector<1x1x4x64xf32> to vector<4x64xf32>
    %cst_56 = arith.constant dense<0.000000e+00> : vector<256x64xf32>
    %44 = tpu.matmul %41, %43, %cst_56 {dimension_numbers = #tpu.dot_dimension_numbers<[1], [0], [0], [1], [0, 0, 1, 1], [], []>} : vector<256x4xf32>, vector<4x64xf32>, vector<256x64xf32> -> vector<256x64xf32>
    %45 = arith.addf %38, %44 : vector<256x64xf32>
    %c0_57 = arith.constant 0 : index
    %c2_58 = arith.constant 2 : index
    %c0_59 = arith.constant 0 : index
    %c0_60 = arith.constant 0 : index
    %46 = vector.load %arg1[%c0_57, %c2_58, %c0_59, %c0_60] : memref<1x18x18x4xf32, #tpu.memory_space<vmem>>, vector<1x16x16x4xf32>
    %47 = vector.shape_cast %46 : vector<1x16x16x4xf32> to vector<16x16x4xf32>
    %48 = vector.shape_cast %47 : vector<16x16x4xf32> to vector<256x4xf32>
    %c2_61 = arith.constant 2 : index
    %c0_62 = arith.constant 0 : index
    %c0_63 = arith.constant 0 : index
    %c0_64 = arith.constant 0 : index
    %49 = vector.load %arg2[%c2_61, %c0_62, %c0_63, %c0_64] : memref<3x3x4x64xf32, #tpu.memory_space<vmem>>, vector<1x1x4x64xf32>
    %50 = vector.shape_cast %49 : vector<1x1x4x64xf32> to vector<4x64xf32>
    %cst_65 = arith.constant dense<0.000000e+00> : vector<256x64xf32>
    %51 = tpu.matmul %48, %50, %cst_65 {dimension_numbers = #tpu.dot_dimension_numbers<[1], [0], [0], [1], [0, 0, 1, 1], [], []>} : vector<256x4xf32>, vector<4x64xf32>, vector<256x64xf32> -> vector<256x64xf32>
    %52 = arith.addf %45, %51 : vector<256x64xf32>
    %c0_66 = arith.constant 0 : index
    %c2_67 = arith.constant 2 : index
    %c1_68 = arith.constant 1 : index
    %c0_69 = arith.constant 0 : index
    %53 = vector.load %arg1[%c0_66, %c2_67, %c1_68, %c0_69] : memref<1x18x18x4xf32, #tpu.memory_space<vmem>>, vector<1x16x16x4xf32>
    %54 = vector.shape_cast %53 : vector<1x16x16x4xf32> to vector<16x16x4xf32>
    %55 = vector.shape_cast %54 : vector<16x16x4xf32> to vector<256x4xf32>
    %c2_70 = arith.constant 2 : index
    %c1_71 = arith.constant 1 : index
    %c0_72 = arith.constant 0 : index
    %c0_73 = arith.constant 0 : index
    %56 = vector.load %arg2[%c2_70, %c1_71, %c0_72, %c0_73] : memref<3x3x4x64xf32, #tpu.memory_space<vmem>>, vector<1x1x4x64xf32>
    %57 = vector.shape_cast %56 : vector<1x1x4x64xf32> to vector<4x64xf32>
    %cst_74 = arith.constant dense<0.000000e+00> : vector<256x64xf32>
    %58 = tpu.matmul %55, %57, %cst_74 {dimension_numbers = #tpu.dot_dimension_numbers<[1], [0], [0], [1], [0, 0, 1, 1], [], []>} : vector<256x4xf32>, vector<4x64xf32>, vector<256x64xf32> -> vector<256x64xf32>
    %59 = arith.addf %52, %58 : vector<256x64xf32>
    %c0_75 = arith.constant 0 : index
    %c2_76 = arith.constant 2 : index
    %c2_77 = arith.constant 2 : index
    %c0_78 = arith.constant 0 : index
    %60 = vector.load %arg1[%c0_75, %c2_76, %c2_77, %c0_78] : memref<1x18x18x4xf32, #tpu.memory_space<vmem>>, vector<1x16x16x4xf32>
    %61 = vector.shape_cast %60 : vector<1x16x16x4xf32> to vector<16x16x4xf32>
    %62 = vector.shape_cast %61 : vector<16x16x4xf32> to vector<256x4xf32>
    %c2_79 = arith.constant 2 : index
    %c2_80 = arith.constant 2 : index
    %c0_81 = arith.constant 0 : index
    %c0_82 = arith.constant 0 : index
    %63 = vector.load %arg2[%c2_79, %c2_80, %c0_81, %c0_82] : memref<3x3x4x64xf32, #tpu.memory_space<vmem>>, vector<1x1x4x64xf32>
    %64 = vector.shape_cast %63 : vector<1x1x4x64xf32> to vector<4x64xf32>
    %cst_83 = arith.constant dense<0.000000e+00> : vector<256x64xf32>
    %65 = tpu.matmul %62, %64, %cst_83 {dimension_numbers = #tpu.dot_dimension_numbers<[1], [0], [0], [1], [0, 0, 1, 1], [], []>} : vector<256x4xf32>, vector<4x64xf32>, vector<256x64xf32> -> vector<256x64xf32>
    %66 = arith.addf %59, %65 : vector<256x64xf32>
    %67 = vector.broadcast %0 : vector<1x64xf32> to vector<256x64xf32>
    %68 = arith.mulf %66, %67 : vector<256x64xf32>
    %69 = vector.broadcast %1 : vector<1x64xf32> to vector<256x64xf32>
    %70 = arith.addf %68, %69 : vector<256x64xf32>
    %cst_84 = arith.constant 0.000000e+00 : f32
    %71 = vector.broadcast %cst_84 : f32 to vector<256x64xf32>
    %72 = arith.cmpf oge, %70, %71 : vector<256x64xf32>
    %73 = vector.broadcast %2 : vector<1x64xf32> to vector<256x64xf32>
    %74 = arith.mulf %73, %70 : vector<256x64xf32>
    %75 = arith.select %72, %70, %74 : vector<256x64xi1>, vector<256x64xf32>
    %76 = vector.shape_cast %75 : vector<256x64xf32> to vector<16x16x64xf32>
    %c0_85 = arith.constant 0 : index
    %c0_86 = arith.constant 0 : index
    %c0_87 = arith.constant 0 : index
    %c0_88 = arith.constant 0 : index
    %77 = vector.load %arg4[%c0_85, %c0_86, %c0_87, %c0_88] : memref<1x16x16x64xf32, #tpu.memory_space<vmem>>, vector<1x16x16x64xf32>
    %78 = vector.shape_cast %77 : vector<1x16x16x64xf32> to vector<16x16x64xf32>
    %79 = vector.shape_cast %76 : vector<16x16x64xf32> to vector<1x16x16x64xf32>
    tpu.vector_store %arg4[%c0_85, %c0_86, %c0_87, %c0_88], %79 {strides = array<i32>} : memref<1x16x16x64xf32, #tpu.memory_space<vmem>>, vector<1x16x16x64xf32>,
    return
  }
  func.func @transform_0(%arg0: i32) -> (i32, i32, i32, i32) {
    %c0_i32 = arith.constant 0 : i32
    %c0_i32_0 = arith.constant 0 : i32
    %c0_i32_1 = arith.constant 0 : i32
    %c0_i32_2 = arith.constant 0 : i32
    return %arg0, %c0_i32, %c0_i32_0, %c0_i32_1 : i32, i32, i32, i32
  }
  func.func @transform_1(%arg0: i32) -> (i32, i32, i32, i32) {
    %c0_i32 = arith.constant 0 : i32
    %c0_i32_0 = arith.constant 0 : i32
    %c0_i32_1 = arith.constant 0 : i32
    %c0_i32_2 = arith.constant 0 : i32
    %c0_i32_3 = arith.constant 0 : i32
    return %c0_i32, %c0_i32_0, %c0_i32_1, %c0_i32_2 : i32, i32, i32, i32
  }
  func.func @transform_2(%arg0: i32) -> (i32, i32) {
    %c0_i32 = arith.constant 0 : i32
    %c0_i32_0 = arith.constant 0 : i32
    %c0_i32_1 = arith.constant 0 : i32
    return %c0_i32, %c0_i32_0 : i32, i32
  }
  func.func @transform_3(%arg0: i32) -> (i32, i32, i32, i32) {
    %c0_i32 = arith.constant 0 : i32
    %c0_i32_0 = arith.constant 0 : i32
    %c0_i32_1 = arith.constant 0 : i32
    %c0_i32_2 = arith.constant 0 : i32
    return %arg0, %c0_i32, %c0_i32_0, %c0_i32_1 : i32, i32, i32, i32
  }
}

</mosaic_0001>

<bundles_post_ra>
// kernel: tpu_custom_call.1
= control target key start
LH: loop header
LB: loop body
LE: loop exit
PB: predicated region body
PF: predicated region fallthrough
CT: control target
= control target key end

     0   :  { %8 = vsyncpa [#allocation3], 0  ;;  %s6784_s0 = inlined_call_operand.vmem [shape: f32[2,18,18,4], index: 0, kind: input, shape index: {}]   ;;  %s6785_s1 = inlined_call_operand.vmem [shape: f32[3,3,4,64], index: 1, kind: input, shape index: {}]   ;;  %s6786_s2 = inlined_call_operand.vmem [shape: f32[3,64], index: 2, kind: input, shape index: {}]   ;;  %s6787_s3 = inlined_call_operand.hbm [shape: f32[2,16,16,64], index: 3, kind: output, shape index: {}]  }
   0x1   :  { %10 = vsyncpa [#allocation3 + $0x1], 0  ;;  %s5548_s12 = smov 0   ;;  %s5550_s13 = smov 0  }
   0x2   :  { %s5552_s14 = smov 0   ;;  %s5554_s15 = smov 0  }
   0x3 LB: > { %s5569_s16 = sadd.s32 4294967295, %s5523_s15   ;;  %s3902_s17 = sadd.s32 4294967294, %s5523_s15   ;;  %s5523_s15 = sphi %s5554_s15, %s6902_s15   ;;  %s5519_s14 = sphi %s5552_s14, %s6901_s14   ;;  %s5515_s13 = sphi %s5550_s13, %s6900_s13   ;;  %s5511_s12 = sphi %s5548_s12, %s6899_s12  }
   0x4   : > { %s5573_s18 = sadd.s32 1, %s5523_s15   ;;  %s91_s19 = sadd.s32 1, %s5519_s14 }
   0x5   : > { %s88_s20 = ssub.s32 %s5523_s15, %s5573_s18  ;;  %p101_p0 = scmp.ne.s32.totalorder %s5519_s14, %s5515_s13 }
   0x6   : > { %p89_p1 = scmp.eq.s32.totalorder %s88_s20, 0  ;;  %p102_p2 = scmp.eq.s32.totalorder %s5569_s16, 1 }
   0x7   : > { %p107_p3 = scmp.ne.s32.totalorder %s5515_s13, %s5511_s12  ;;  %p108_p4 = scmp.eq.s32.totalorder %s3902_s17, 1 }
   0x8   : > { %s5584_s21 = scalar_select %p89_p1, %s5519_s14, %s91_s19  }
   0x9   : > { %p5586_p5 = por %p102_p2, %p101_p0  ;;  %p5590_p6 = por %p108_p4, %p107_p3 }
   0xa   : > { %p3905_p7 = scmp.ge.s32.totalorder %s5523_s15, 1  ;;  %p140_p8 = scmp.lt.s32.totalorder %s5523_s15, 3 }
   0xc   : > { %p141_p9 = pnand %p3905_p7, %p140_p8 }
   0xe   : > { %144 = sbr.rel (%p141_p9) target bundleno = 551 (0x227), region = 32 }
  0x15   : > { %v3908_v0 = vld [vmem:[%s6785_s1 + $0x4] sm:$0xf]  ;;  %vm336_vm0 = vcmask 1043456   ;;  %v5602_v1 = vld [vmem:[%s6785_s1 + $0x10] sm:$0xf]  ;;  %p164_p10 = scmp.lt.s32.totalorder %s5569_s16, 1 }
  0x16   : > { %4711 = vmatprep.subr.msk.mxu1 %vm336_vm0, %v3908_v0  ;;  %4911 = vmatprep.subr.msk.mxu0 %vm336_vm0, %v5602_v1  ;;  %v204_v2 = vld [vmem:[%s6785_s1] sm:$0xf]  ;;  %v4173_v3 = vld [vmem:[%s6785_s1 + $0x14] sm:$0xf]  ;;  %vm239_vm1 = vcmask 31744   ;;  %s161_s4 = sand.u32 1, %s5515_s13  }
  0x17   : > { %4712 = vmatpush3.msk.msra.mxu1 %vm336_vm0, %v3908_v0  ;;  %4912 = vmatpush3.msk.msra.mxu0 %vm336_vm0, %v5602_v1  ;;  %s165_s5 = scalar_select %p164_p10, %s5569_s16, 1  ;;  %v4239_v9 = vld [vmem:[%s6785_s1 + $0x18] sm:$0xf]  ;;  %v5642_v10 = vld [vmem:[%s6785_s1 + $0x8] sm:$0xf]  ;;  %vm3793_vm3 = vcmask 523264  }
  0x18   : > { %4761 = vmatprep.subr.msk.mxu1 %vm336_vm0, %v204_v2  ;;  %4961 = vmatprep.subr.msk.mxu0 %vm336_vm0, %v4173_v3  ;;  %v5761_v28 = vld [vmem:[%s6785_s1 + $0x1c] sm:$0xf]  ;;  %v5924_v61 = vld [vmem:[%s6785_s1 + $0xc] sm:$0xf]  ;;  %s3906_s7 = sshll.u32 %s161_s4, 8  ;;  %s4413_s11 = sshll.u32 %s5569_s16, 12 }
  0x19   : > { %s5419_s6 = smul.u32 432, %s165_s5  ;;  %s6571_s10 = scalar_lea.vmem [#allocation2], %s3906_s7 }
  0x1a   : > { %s3840_s17 = sshll.u32 %s6571_s10, 4  ;;  %s6733_s16 = scalar_lea.hbm %s6787_s3, %s4413_s11  ;;  %s6735_s17 = int_to_ptr.vmem [resolvable:$true] %s3840_s17 }
  0x1b   : > { %s5623_s9 = scalar_lea.vmem %s6784_s0, %s5419_s6  ;;  %s6743_s24 = scalar_lea.sflag [#allocation3], %s161_s4 }
  0x1c   : > { %v205_v4 = vld [vmem:[%s5623_s9 + $0x1] sm:$0xff]  ;;  %v4075_v5 = vld [vmem:[%s5623_s9 + $0x19] sm:$0xff]  ;;  %v206_v6 = vld [vmem:[%s5623_s9 + $0x9] sm:$0xff]  ;;  %s5461_s25 = scalar_lea.vmem %s6735_s17, 4096  ;;  %s5525_s26 = smov [#allocation2]  }
  0x1d   : > { %4713 = vmatprep.mubr.msk.f32.mxu1 %vm239_vm1, %v205_v4  ;;  %4913 = vmatprep.mubr.msk.f32.mxu0 %vm239_vm1, %v4075_v5  ;;  %v4076_v7 = vld [vmem:[%s5623_s9 + $0x21] sm:$0xff]  ;;  %v5632_v8 = vld [vmem:[%s5623_s9 + $0x31] sm:$0xff]  ;;  %v5647_v11 = vld [vmem:[%s5623_s9 + $0x39] sm:$0xff]  ;;  %p5462_p11 = scmp.ne.s32.totalorder %s6735_s17, %s5461_s25  ;;  %s5465_s27 = sshll.u32 %s5525_s26, 4  ;;  %s5466_s27 = int_to_ptr.vmem [resolvable:$false] %s5465_s27 }
  0x1e   : > { %4714 = vmatmul.mubr.msk.f32.vlgmr.msra.gmra.mrb[0].mxu1 %vm239_vm1, %v206_v6  ;;  %4914 = vmatmul.mubr.msk.f32.vlgmr.msra.gmra.mrb[0].mxu0 %vm239_vm1, %v4076_v7  ;;  %v5653_v12 = vld [vmem:[%s5623_s9 + $0x49] sm:$0xff]  ;;  %v5666_v13 = vld [vmem:[%s5623_s9 + $0x51] sm:$0xff]  ;;  %v5669_v14 = vld [vmem:[%s5623_s9 + $0x61] sm:$0xff]  ;;  %s5467_s28 = scalar_lea.vmem %s5466_s27, 8192  ;;  %p5468_p0 = scmp.lt.s32.totalorder %s6735_s17, %s5466_s27 }
  0x1f   : > { %4762 = vmatpush3.msk.msra.mxu1 %vm336_vm0, %v204_v2  ;;  %4962 = vmatpush3.msk.msra.mxu0 %vm336_vm0, %v4173_v3  ;;  %v5680_v15 = vld [vmem:[%s5623_s9 + $0x69] sm:$0xff]  ;;  %v5683_v16 = vld [vmem:[%s5623_s9 + $0x79] sm:$0xff]  ;;  %v5694_v17 = vld [vmem:[%s5623_s9 + $0x81] sm:$0xff]  ;;  %p5463_p12 = pnand %p5462_p11, %p5586_p5  ;;  %p5469_p1 = scmp.lt.s32.totalorder %s5467_s28, %s5461_s25 }
  0x20   : > { %4716 = vmatprep.mubr.msk.f32.mxu1 %vm239_vm1, %v4075_v5  ;;  %4916 = vmatprep.mubr.msk.f32.mxu0 %vm239_vm1, %v5632_v8  ;;  %v5697_v18 = vld [vmem:[%s5623_s9 + $0x91] sm:$0xff]  ;;  %v5708_v19 = vld [vmem:[%s5623_s9 + $0x99] sm:$0xff]  ;;  %v5711_v20 = vld [vmem:[%s5623_s9 + $0xa9] sm:$0xff] }
  0x21   : > { %5011 = vmatprep.subr.msk.mxu0 %vm336_vm0, %v4239_v9  ;;  %4811 = vmatprep.subr.msk.mxu1 %vm336_vm0, %v5642_v10  ;;  %v5722_v21 = vld [vmem:[%s5623_s9 + $0xb1] sm:$0xff]  ;;  %v5725_v22 = vld [vmem:[%s5623_s9 + $0xc1] sm:$0xff]  ;;  %v5736_v23 = vld [vmem:[%s5623_s9 + $0xc9] sm:$0xff]  ;;  %p5464_p13 = pneg %p5463_p12  ;;  %p5470_p2 = por %p5469_p1, %p5468_p0 }
  0x22   : > { %4717 = vmatmul.mubr.msk.f32.gmra.mrb[2].mxu1 %vm239_vm1, %v4076_v7  ;;  %4917 = vmatmul.mubr.msk.f32.gmra.mrb[2].mxu0 %vm239_vm1, %v5647_v11  ;;  %v5739_v24 = vld [vmem:[%s5623_s9 + $0x1a] sm:$0xff]  ;;  %v5750_v25 = vld [vmem:[%s5623_s9 + $0x22] sm:$0xff]  ;;  %v5756_v27 = vld [vmem:[%s5623_s9 + $0x32] sm:$0xff] }
  0x23   : > { %4719 = vmatprep.mubr.msk.f32.mxu1 %vm239_vm1, %v5632_v8  ;;  %4919 = vmatprep.mubr.msk.f32.mxu0 %vm239_vm1, %v5653_v12  ;;  %v5753_v26 = vld [vmem:[%s5623_s9 + $0xd9] sm:$0xff]  ;;  %v5771_v29 = vld [vmem:[%s5623_s9 + $0xe1] sm:$0xff]  ;;  %v5779_v31 = vld [vmem:[%s5623_s9 + $0xf1] sm:$0xff]  ;;  %p5471_p3 = pnand %p5470_p2, %p5464_p13 }
  0x24   : > { %6835 = vst [vmem:[#allocation5_spill] sm:$0xff] %v5771_v29  ;;  %v5774_v30 = vld [vmem:[%s5623_s9 + $0x3a] sm:$0xff]  ;;  %6836 = vst [vmem:[#allocation6_spill] sm:$0xff] %v5779_v31  ;;  %v5782_v32 = vld [vmem:[%s5623_s9 + $0x4a] sm:$0xff] }
  0x25   : > { %v5795_v33 = vld [vmem:[%s5623_s9 + $0xf9] sm:$0xff]  ;;  %v5801_v35 = vld [vmem:[%s5623_s9 + $0x109] sm:$0xff]  ;;  %v5815_v37 = vld [vmem:[%s5623_s9 + $0x111] sm:$0xff] }
  0x26   : > { %4720 = vmatmul.mubr.msk.f32.gmra.mrb[4].mxu1 %vm239_vm1, %v5647_v11  ;;  %4920 = vmatmul.mubr.msk.f32.gmra.mrb[4].mxu0 %vm239_vm1, %v5666_v13  ;;  %6837 = vst [vmem:[#allocation7_spill] sm:$0xff] %v5795_v33  ;;  %v5798_v34 = vld [vmem:[%s5623_s9 + $0x52] sm:$0xff]  ;;  %6838 = vst [vmem:[#allocation8_spill] sm:$0xff] %v5801_v35  ;;  %v5804_v36 = vld [vmem:[%s5623_s9 + $0x62] sm:$0xff] }
  0x27   : > { %4722 = vmatprep.mubr.msk.f32.mxu1 %vm239_vm1, %v5653_v12  ;;  %4922 = vmatprep.mubr.msk.f32.mxu0 %vm239_vm1, %v5669_v14  ;;  %6839 = vst [vmem:[#allocation9_spill] sm:$0xff] %v5815_v37  ;;  %v5818_v38 = vld [vmem:[%s5623_s9 + $0x6a] sm:$0xff]  ;;  %v5821_v39 = vld [vmem:[%s5623_s9 + $0x121] sm:$0xff]  ;;  %v5841_v43 = vld [vmem:[%s5623_s9 + $0x139] sm:$0xff] }
  0x28   : > { %6840 = vst [vmem:[#allocation10_spill] sm:$0xff] %v5821_v39  ;;  %v5824_v40 = vld [vmem:[%s5623_s9 + $0x7a] sm:$0xff]  ;;  %v5835_v41 = vld [vmem:[%s5623_s9 + $0x129] sm:$0xff]  ;;  %6842 = vst [vmem:[#allocation12_spill] sm:$0xff] %v5841_v43 }
  0x29   : > { %6841 = vst [vmem:[#allocation11_spill] sm:$0xff] %v5835_v41  ;;  %v5838_v42 = vld [vmem:[%s5623_s9 + $0x82] sm:$0xff]  ;;  %v5844_v44 = vld [vmem:[%s5623_s9 + $0x92] sm:$0xff]  ;;  %v5858_v46 = vld [vmem:[%s5623_s9 + $0x9a] sm:$0xff] }
  0x2a   : > { %4723 = vmatmul.mubr.msk.f32.gmra.mrb[6].mxu1 %vm239_vm1, %v5666_v13  ;;  %4923 = vmatmul.mubr.msk.f32.gmra.mrb[6].mxu0 %vm239_vm1, %v5680_v15  ;;  %v5855_v45 = vld [vmem:[%s5623_s9 + $0x141] sm:$0xff]  ;;  %v5861_v47 = vld [vmem:[%s5623_s9 + $0x151] sm:$0xff]  ;;  %v5875_v49 = vld [vmem:[%s5623_s9 + $0x159] sm:$0xff] }
  0x2b   : > { %4725 = vmatprep.mubr.msk.f32.mxu1 %vm239_vm1, %v5669_v14  ;;  %4925 = vmatprep.mubr.msk.f32.mxu0 %vm239_vm1, %v5683_v16  ;;  %6843 = vst [vmem:[#allocation13_spill] sm:$0xff] %v5855_v45  ;;  %6844 = vst [vmem:[#allocation14_spill] sm:$0xff] %v5861_v47  ;;  %v5864_v48 = vld [vmem:[%s5623_s9 + $0xaa] sm:$0xff]  ;;  %v5878_v50 = vld [vmem:[%s5623_s9 + $0xb2] sm:$0xff] }
  0x2c   : > { %6845 = vst [vmem:[#allocation15_spill] sm:$0xff] %v5875_v49  ;;  %v5881_v51 = vld [vmem:[%s5623_s9 + $0x169] sm:$0xff]  ;;  %v5895_v53 = vld [vmem:[%s5623_s9 + $0x171] sm:$0xff]  ;;  %v172_v55 = vld [vmem:[%s5623_s9] sm:$0xff] }
  0x2d   : > { %6846 = vst [vmem:[#allocation16_spill] sm:$0xff] %v5881_v51  ;;  %v5884_v52 = vld [vmem:[%s5623_s9 + $0xc2] sm:$0xff]  ;;  %6847 = vst [vmem:[#allocation17_spill] sm:$0xff] %v5895_v53  ;;  %v5898_v54 = vld [vmem:[%s5623_s9 + $0xca] sm:$0xff] }
  0x2e   : > { %4726 = vmatmul.mubr.msk.f32.gmra.mrb[8].mxu1 %vm239_vm1, %v5680_v15  ;;  %4926 = vmatmul.mubr.msk.f32.gmra.mrb[8].mxu0 %vm239_vm1, %v5694_v17  ;;  %v5902_v56 = vld [vmem:[%s5623_s9 + $0xda] sm:$0xff]  ;;  %v173_v57 = vld [vmem:[%s5623_s9 + $0x8] sm:$0xff]  ;;  %v5919_v60 = vld [vmem:[%s5623_s9 + $0xf2] sm:$0xff] }
  0x2f   : > { %4728 = vmatprep.mubr.msk.f32.mxu1 %vm239_vm1, %v5683_v16  ;;  %4928 = vmatprep.mubr.msk.f32.mxu0 %vm239_vm1, %v5697_v18  ;;  %v5913_v58 = vld [vmem:[%s5623_s9 + $0xe2] sm:$0xff]  ;;  %v5916_v59 = vld [vmem:[%s5623_s9 + $0x18] sm:$0xff]  ;;  %v5942_v0 = vld [vmem:[%s5623_s9 + $0x30] sm:$0xff] }
  0x30   : > { %6848 = vst [vmem:[#allocation18_spill] sm:$0xff] %v5916_v59  ;;  %v5934_v62 = vld [vmem:[%s5623_s9 + $0x20] sm:$0xff]  ;;  %6850 = vst [vmem:[#allocation20_spill] sm:$0xff] %v5942_v0  ;;  %v5945_v2 = vld [vmem:[%s5623_s9 + $0x10a] sm:$0xff] }
  0x31   : > { %6849 = vst [vmem:[#allocation19_spill] sm:$0xff] %v5934_v62  ;;  %v5937_v63 = vld [vmem:[%s5623_s9 + $0xfa] sm:$0xff]  ;;  %v5961_v4 = vld [vmem:[%s5623_s9 + $0x112] sm:$0xff]  ;;  %v5964_v5 = vld [vmem:[%s5623_s9 + $0x48] sm:$0xff] }
  0x32   : > { %4729 = vmatmul.mubr.msk.f32.gmra.mrb[10].mxu1 %vm239_vm1, %v5694_v17  ;;  %4929 = vmatmul.mubr.msk.f32.gmra.mrb[10].mxu0 %vm239_vm1, %v5708_v19  ;;  %v5958_v3 = vld [vmem:[%s5623_s9 + $0x38] sm:$0xff]  ;;  %6852 = vst [vmem:[#allocation22_spill] sm:$0xff] %v5964_v5  ;;  %v5967_v6 = vld [vmem:[%s5623_s9 + $0x122] sm:$0xff]  ;;  %v5978_v7 = vld [vmem:[%s5623_s9 + $0x50] sm:$0xff] }
  0x33   : > { %4731 = vmatprep.mubr.msk.f32.mxu1 %vm239_vm1, %v5697_v18  ;;  %4931 = vmatprep.mubr.msk.f32.mxu0 %vm239_vm1, %v5711_v20  ;;  %6851 = vst [vmem:[#allocation21_spill] sm:$0xff] %v5958_v3  ;;  %6853 = vst [vmem:[#allocation23_spill] sm:$0xff] %v5978_v7 }
  0x36   : > { %4732 = vmatmul.mubr.msk.f32.gmra.mrb[12].mxu1 %vm239_vm1, %v5708_v19  ;;  %4932 = vmatmul.mubr.msk.f32.gmra.mrb[12].mxu0 %vm239_vm1, %v5722_v21 }
  0x37   : > { %4734 = vmatprep.mubr.msk.f32.mxu1 %vm239_vm1, %v5711_v20  ;;  %4934 = vmatprep.mubr.msk.f32.mxu0 %vm239_vm1, %v5725_v22 }
  0x3a   : > { %4735 = vmatmul.mubr.msk.f32.gmra.mrb[14].mxu1 %vm239_vm1, %v5722_v21  ;;  %4935 = vmatmul.mubr.msk.f32.gmra.mrb[14].mxu0 %vm239_vm1, %v5736_v23 }
  0x3b   : > { %4737 = vmatprep.mubr.msk.f32.mxu1 %vm239_vm1, %v5725_v22  ;;  %4963 = vmatprep.mubr.msk.f32.mxu0 %vm239_vm1, %v5739_v24 }
  0x3e   : > { %4738 = vmatmul.mubr.msk.f32.gmra.mrb[16].mxu1 %vm239_vm1, %v5736_v23  ;;  %4964 = vmatmul.mubr.msk.f32.vlgmr.msra.gmra.mrb[0].mxu0 %vm239_vm1, %v5750_v25 }
  0x3f   : > { %5012 = vmatpush3.msk.msra.mxu0 %vm336_vm0, %v4239_v9  ;;  %4740 = vmatprep.mubr.msk.f32.mxu1 %vm239_vm1, %v5753_v26  ;;  %v5981_v9 = vld [vmem:[%s5623_s9 + $0x12a] sm:$0xff] }
  0x40   : > { %4966 = vmatprep.mubr.msk.f32.mxu0 %vm239_vm1, %v5756_v27  ;;  %5061 = vmatprep.subr.msk.mxu0 %vm336_vm0, %v5761_v28 }
  0x42   : > { %4741 = vmatmul.mubr.msk.f32.gmra.mrb[18].mxu1 %vm239_vm1, %v5771_v29  ;;  %4967 = vmatmul.mubr.msk.f32.gmra.mrb[2].mxu0 %vm239_vm1, %v5774_v30  ;;  %v6078_v29 = vld [vmem:[%s5623_s9 + $0xd8] sm:$0xff] }
  0x43   : > { %4743 = vmatprep.mubr.msk.f32.mxu1 %vm239_vm1, %v5779_v31  ;;  %4969 = vmatprep.mubr.msk.f32.mxu0 %vm239_vm1, %v5782_v32  ;;  %v6061_v31 = vld [vmem:[%s5623_s9 + $0x18a] sm:$0xff] }
  0x44   : > { %6864 = vst [vmem:[#allocation34_spill] sm:$0xff] %v6061_v31 }
  0x46   : > { %4744 = vmatmul.mubr.msk.f32.gmra.mrb[20].mxu1 %vm239_vm1, %v5795_v33  ;;  %4970 = vmatmul.mubr.msk.f32.gmra.mrb[4].mxu0 %vm239_vm1, %v5798_v34  ;;  %v6047_v33 = vld [vmem:[%s5623_s9 + $0x182] sm:$0xff] }
  0x47   : > { %4746 = vmatprep.mubr.msk.f32.mxu1 %vm239_vm1, %v5801_v35  ;;  %4972 = vmatprep.mubr.msk.f32.mxu0 %vm239_vm1, %v5804_v36  ;;  %v6044_v35 = vld [vmem:[%s5623_s9 + $0xa8] sm:$0xff]  ;;  %6862 = vst [vmem:[#allocation32_spill] sm:$0xff] %v6047_v33 }
  0x48   : > { %6861 = vst [vmem:[#allocation31_spill] sm:$0xff] %v6044_v35 }
  0x4a   : > { %4747 = vmatmul.mubr.msk.f32.gmra.mrb[22].mxu1 %vm239_vm1, %v5815_v37  ;;  %4973 = vmatmul.mubr.msk.f32.gmra.mrb[6].mxu0 %vm239_vm1, %v5818_v38  ;;  %v6041_v37 = vld [vmem:[%s5623_s9 + $0x172] sm:$0xff] }
  0x4b   : > { %4749 = vmatprep.mubr.msk.f32.mxu1 %vm239_vm1, %v5821_v39  ;;  %4975 = vmatprep.mubr.msk.f32.mxu0 %vm239_vm1, %v5824_v40  ;;  %v6038_v39 = vld [vmem:[%s5623_s9 + $0x98] sm:$0xff]  ;;  %6860 = vst [vmem:[#allocation30_spill] sm:$0xff] %v6041_v37 }
  0x4c   : > { %6859 = vst [vmem:[#allocation29_spill] sm:$0xff] %v6038_v39 }
  0x4e   : > { %4750 = vmatmul.mubr.msk.f32.gmra.mrb[24].mxu1 %vm239_vm1, %v5835_v41  ;;  %4976 = vmatmul.mubr.msk.f32.gmra.mrb[8].mxu0 %vm239_vm1, %v5838_v42  ;;  %v6027_v41 = vld [vmem:[%s5623_s9 + $0x16a] sm:$0xff] }
  0x4f   : > { %4752 = vmatprep.mubr.msk.f32.mxu1 %vm239_vm1, %v5841_v43  ;;  %4978 = vmatprep.mubr.msk.f32.mxu0 %vm239_vm1, %v5844_v44  ;;  %v6024_v43 = vld [vmem:[%s5623_s9 + $0x90] sm:$0xff] }
  0x50   : > { %6858 = vst [vmem:[#allocation28_spill] sm:$0xff] %v6024_v43 }
  0x52   : > { %4753 = vmatmul.mubr.msk.f32.gmra.mrb[26].mxu1 %vm239_vm1, %v5855_v45  ;;  %4979 = vmatmul.mubr.msk.f32.gmra.mrb[10].mxu0 %vm239_vm1, %v5858_v46  ;;  %v6021_v45 = vld [vmem:[%s5623_s9 + $0x15a] sm:$0xff] }
  0x53   : > { %4755 = vmatprep.mubr.msk.f32.mxu1 %vm239_vm1, %v5861_v47  ;;  %4981 = vmatprep.mubr.msk.f32.mxu0 %vm239_vm1, %v5864_v48  ;;  %v6018_v47 = vld [vmem:[%s5623_s9 + $0x80] sm:$0xff] }
  0x54   : > { %6857 = vst [vmem:[#allocation27_spill] sm:$0xff] %v6018_v47 }
  0x56   : > { %4756 = vmatmul.mubr.msk.f32.gmra.mrb[28].mxu1 %vm239_vm1, %v5875_v49  ;;  %4982 = vmatmul.mubr.msk.f32.gmra.mrb[12].mxu0 %vm239_vm1, %v5878_v50  ;;  %v6007_v49 = vld [vmem:[%s5623_s9 + $0x152] sm:$0xff] }
  0x57   : > { %4758 = vmatprep.mubr.msk.f32.mxu1 %vm239_vm1, %v5881_v51  ;;  %4984 = vmatprep.mubr.msk.f32.mxu0 %vm239_vm1, %v5884_v52  ;;  %v6004_v51 = vld [vmem:[%s5623_s9 + $0x78] sm:$0xff] }
  0x58   : > { %6856 = vst [vmem:[#allocation26_spill] sm:$0xff] %v6004_v51 }
  0x5a   : > { %4759 = vmatmul.mubr.msk.f32.gmra.mrb[30].mxu1 %vm239_vm1, %v5895_v53  ;;  %4985 = vmatmul.mubr.msk.f32.gmra.mrb[14].mxu0 %vm239_vm1, %v5898_v54  ;;  %v6001_v53 = vld [vmem:[%s5623_s9 + $0x142] sm:$0xff] }
  0x5b   : > { %4763 = vmatprep.mubr.msk.f32.mxu1 %vm239_vm1, %v172_v55  ;;  %4987 = vmatprep.mubr.msk.f32.mxu0 %vm239_vm1, %v5902_v56  ;;  %v5987_v55 = vld [vmem:[%s5623_s9 + $0x13a] sm:$0xff] }
  0x5e   : > { %4764 = vmatmul.mubr.msk.f32.vlgmr.msra.gmra.mrb[0].mxu1 %vm239_vm1, %v173_v57  ;;  %4988 = vmatmul.mubr.msk.f32.gmra.mrb[16].mxu0 %vm239_vm1, %v5913_v58  ;;  %v5998_v57 = vld [vmem:[%s5623_s9 + $0x68] sm:$0xff] }
  0x5f   : > { %4812 = vmatpush3.msk.msra.mxu1 %vm336_vm0, %v5642_v10  ;;  %4766 = vmatprep.mubr.msk.f32.mxu1 %vm239_vm1, %v5916_v59  ;;  %v5984_v10 = vld [vmem:[%s5623_s9 + $0x60] sm:$0xff]  ;;  %6855 = vst [vmem:[#allocation25_spill] sm:$0xff] %v5998_v57 }
  0x60   : > { %4990 = vmatprep.mubr.msk.f32.mxu0 %vm239_vm1, %v5919_v60  ;;  %4861 = vmatprep.subr.msk.mxu1 %vm336_vm0, %v5924_v61  ;;  %6854 = vst [vmem:[#allocation24_spill] sm:$0xff] %v5984_v10  ;;  %v6064_v59 = vld [vmem:[%s5623_s9 + $0xc0] sm:$0xff] }
  0x62   : > { %4767 = vmatmul.mubr.msk.f32.gmra.mrb[2].mxu1 %vm239_vm1, %v5934_v62  ;;  %4991 = vmatmul.mubr.msk.f32.gmra.mrb[18].mxu0 %vm239_vm1, %v5937_v63  ;;  %v6058_v62 = vld [vmem:[%s5623_s9 + $0xb0] sm:$0xff] }
  0x63   : > { %4769 = vmatprep.mubr.msk.f32.mxu1 %vm239_vm1, %v5942_v0  ;;  %4993 = vmatprep.mubr.msk.f32.mxu0 %vm239_vm1, %v5945_v2  ;;  %6863 = vst [vmem:[#allocation33_spill] sm:$0xff] %v6058_v62 }
  0x66   : > { %4770 = vmatmul.mubr.msk.f32.gmra.mrb[4].mxu1 %vm239_vm1, %v5958_v3  ;;  %4994 = vmatmul.mubr.msk.f32.gmra.mrb[20].mxu0 %vm239_vm1, %v5961_v4 }
  0x67   : > { %4772 = vmatprep.mubr.msk.f32.mxu1 %vm239_vm1, %v5964_v5  ;;  %4996 = vmatprep.mubr.msk.f32.mxu0 %vm239_vm1, %v5967_v6 }
  0x6a   : > { %4773 = vmatmul.mubr.msk.f32.gmra.mrb[6].mxu1 %vm239_vm1, %v5978_v7  ;;  %4997 = vmatmul.mubr.msk.f32.gmra.mrb[22].mxu0 %vm239_vm1, %v5981_v9 }
  0x6b   : > { %4775 = vmatprep.mubr.msk.f32.mxu1 %vm239_vm1, %v5984_v10  ;;  %4999 = vmatprep.mubr.msk.f32.mxu0 %vm239_vm1, %v5987_v55 }
  0x6e   : > { %4776 = vmatmul.mubr.msk.f32.gmra.mrb[8].mxu1 %vm239_vm1, %v5998_v57  ;;  %5000 = vmatmul.mubr.msk.f32.gmra.mrb[24].mxu0 %vm239_vm1, %v6001_v53 }
  0x6f   : > { %4778 = vmatprep.mubr.msk.f32.mxu1 %vm239_vm1, %v6004_v51  ;;  %5002 = vmatprep.mubr.msk.f32.mxu0 %vm239_vm1, %v6007_v49 }
  0x72   : > { %4779 = vmatmul.mubr.msk.f32.gmra.mrb[10].mxu1 %vm239_vm1, %v6018_v47  ;;  %5003 = vmatmul.mubr.msk.f32.gmra.mrb[26].mxu0 %vm239_vm1, %v6021_v45 }
  0x73   : > { %4781 = vmatprep.mubr.msk.f32.mxu1 %vm239_vm1, %v6024_v43  ;;  %5005 = vmatprep.mubr.msk.f32.mxu0 %vm239_vm1, %v6027_v41 }
  0x76   : > { %4782 = vmatmul.mubr.msk.f32.gmra.mrb[12].mxu1 %vm239_vm1, %v6038_v39  ;;  %5006 = vmatmul.mubr.msk.f32.gmra.mrb[28].mxu0 %vm239_vm1, %v6041_v37  ;;  %v6083_v37 = vld [vmem:[%s6785_s1 + $0x20] sm:$0xf] }
  0x77   : > { %4784 = vmatprep.mubr.msk.f32.mxu1 %vm239_vm1, %v6044_v35  ;;  %5008 = vmatprep.mubr.msk.f32.mxu0 %vm239_vm1, %v6047_v33  ;;  %v6075_v33 = vld [vmem:[%s5623_s9 + $0xc8] sm:$0xff] }
  0x78   : > { %6865 = vst [vmem:[#allocation35_spill] sm:$0xff] %v6075_v33 }
  0x7a   : > { %4785 = vmatmul.mubr.msk.f32.gmra.mrb[14].mxu1 %vm239_vm1, %v6058_v62  ;;  %5009 = vmatmul.mubr.msk.f32.gmra.mrb[30].mxu0 %vm239_vm1, %v6061_v31  ;;  %v6094_v31 = vld [vmem:[%s5623_s9 + $0xe0] sm:$0xff] }
  0x7b   : > { %4787 = vmatprep.mubr.msk.f32.mxu1 %vm239_vm1, %v6064_v59  ;;  %5013 = vmatprep.mubr.msk.f32.mxu0 %vm239_vm1, %v5942_v0  ;;  %v6099_v0 = vld [vmem:[%s5623_s9 + $0xf0] sm:$0xff] }
  0x7e   : > { %4788 = vmatmul.mubr.msk.f32.gmra.mrb[16].mxu1 %vm239_vm1, %v6075_v33  ;;  %5014 = vmatmul.mubr.msk.f32.vlgmr.msra.gmra.mrb[0].mxu0 %vm239_vm1, %v5958_v3  ;;  %v889_v3 = vld [vmem:[%s5623_s9 + $0x2] sm:$0xff] }
  0x7f   : > { %5062 = vmatpush3.msk.msra.mxu0 %vm336_vm0, %v5761_v28  ;;  %4790 = vmatprep.mubr.msk.f32.mxu1 %vm239_vm1, %v6078_v29  ;;  %v6112_v28 = vld [vmem:[%s5623_s9 + $0xf8] sm:$0xff] }
  0x80   : > { %5016 = vmatprep.mubr.msk.f32.mxu0 %vm239_vm1, %v5964_v5  ;;  %5111 = vmatprep.subr.msk.mxu0 %vm336_vm0, %v6083_v37  ;;  %v6115_v5 = vld [vmem:[%s5623_s9 + $0x108] sm:$0xff] }
  0x82   : > { %4791 = vmatmul.mubr.msk.f32.gmra.mrb[18].mxu1 %vm239_vm1, %v6094_v31  ;;  %5017 = vmatmul.mubr.msk.f32.gmra.mrb[2].mxu0 %vm239_vm1, %v5978_v7  ;;  %v6126_v7 = vld [vmem:[%s5623_s9 + $0x110] sm:$0xff] }
  0x83   : > { %4793 = vmatprep.mubr.msk.f32.mxu1 %vm239_vm1, %v6099_v0  ;;  %5019 = vmatprep.mubr.msk.f32.mxu0 %vm239_vm1, %v5984_v10  ;;  %v6129_v10 = vld [vmem:[%s5623_s9 + $0x120] sm:$0xff] }
  0x86   : > { %4794 = vmatmul.mubr.msk.f32.gmra.mrb[20].mxu1 %vm239_vm1, %v6112_v28  ;;  %5020 = vmatmul.mubr.msk.f32.gmra.mrb[4].mxu0 %vm239_vm1, %v5998_v57  ;;  %v6140_v57 = vld [vmem:[%s5623_s9 + $0x128] sm:$0xff] }
  0x87   : > { %4796 = vmatprep.mubr.msk.f32.mxu1 %vm239_vm1, %v6115_v5  ;;  %5022 = vmatprep.mubr.msk.f32.mxu0 %vm239_vm1, %v6004_v51  ;;  %v6143_v51 = vld [vmem:[%s5623_s9 + $0x138] sm:$0xff] }
  0x8a   : > { %4797 = vmatmul.mubr.msk.f32.gmra.mrb[22].mxu1 %vm239_vm1, %v6126_v7  ;;  %5023 = vmatmul.mubr.msk.f32.gmra.mrb[6].mxu0 %vm239_vm1, %v6018_v47  ;;  %v6154_v47 = vld [vmem:[%s5623_s9 + $0x140] sm:$0xff] }
  0x8b   : > { %4799 = vmatprep.mubr.msk.f32.mxu1 %vm239_vm1, %v6129_v10  ;;  %5025 = vmatprep.mubr.msk.f32.mxu0 %vm239_vm1, %v6024_v43  ;;  %v6157_v43 = vld [vmem:[%s5623_s9 + $0x150] sm:$0xff] }
  0x8e   : > { %4800 = vmatmul.mubr.msk.f32.gmra.mrb[24].mxu1 %vm239_vm1, %v6140_v57  ;;  %5026 = vmatmul.mubr.msk.f32.gmra.mrb[8].mxu0 %vm239_vm1, %v6038_v39  ;;  %v6168_v39 = vld [vmem:[%s5623_s9 + $0x158] sm:$0xff] }
  0x8f   : > { %4802 = vmatprep.mubr.msk.f32.mxu1 %vm239_vm1, %v6143_v51  ;;  %5028 = vmatprep.mubr.msk.f32.mxu0 %vm239_vm1, %v6044_v35  ;;  %v6171_v35 = vld [vmem:[%s5623_s9 + $0x168] sm:$0xff] }
  0x92   : > { %4803 = vmatmul.mubr.msk.f32.gmra.mrb[26].mxu1 %vm239_vm1, %v6154_v47  ;;  %5029 = vmatmul.mubr.msk.f32.gmra.mrb[10].mxu0 %vm239_vm1, %v6058_v62  ;;  %v6182_v62 = vld [vmem:[%s5623_s9 + $0x170] sm:$0xff] }
  0x93   : > { %4805 = vmatprep.mubr.msk.f32.mxu1 %vm239_vm1, %v6157_v43  ;;  %5031 = vmatprep.mubr.msk.f32.mxu0 %vm239_vm1, %v6064_v59 }
  0x96   : > { %4806 = vmatmul.mubr.msk.f32.gmra.mrb[28].mxu1 %vm239_vm1, %v6168_v39  ;;  %5032 = vmatmul.mubr.msk.f32.gmra.mrb[12].mxu0 %vm239_vm1, %v6075_v33  ;;  %v890_v33 = vld [vmem:[%s5623_s9 + $0xa] sm:$0xff] }
  0x97   : > { %4808 = vmatprep.mubr.msk.f32.mxu1 %vm239_vm1, %v6171_v35  ;;  %5034 = vmatprep.mubr.msk.f32.mxu0 %vm239_vm1, %v6078_v29 }
  0x9a   : > { %4809 = vmatmul.mubr.msk.f32.gmra.mrb[30].mxu1 %vm239_vm1, %v6182_v62  ;;  %5035 = vmatmul.mubr.msk.f32.gmra.mrb[14].mxu0 %vm239_vm1, %v6094_v31 }
  0x9b   : > { %4813 = vmatprep.mubr.msk.f32.mxu1 %vm239_vm1, %v889_v3  ;;  %5037 = vmatprep.mubr.msk.f32.mxu0 %vm239_vm1, %v6099_v0  ;;  %v6882_v3 = vld [vmem:[#allocation25_spill] sm:$0xff] }
  0x9e   : > { %4814 = vmatmul.mubr.msk.f32.vlgmr.msra.gmra.mrb[0].mxu1 %vm239_vm1, %v890_v33  ;;  %5038 = vmatmul.mubr.msk.f32.gmra.mrb[16].mxu0 %vm239_vm1, %v6112_v28  ;;  %v4237_v33 = vld [vmem:[%s5623_s9 + $0x198] sm:$0xff] }
  0x9f   : > { %4862 = vmatpush3.msk.msra.mxu1 %vm336_vm0, %v5924_v61  ;;  %4816 = vmatprep.mubr.msk.f32.mxu1 %vm239_vm1, %v5739_v24  ;;  %v6237_v24 = vld [vmem:[%s5623_s9 + $0x180] sm:$0xff] }
  0xa0   : > { %5040 = vmatprep.mubr.msk.f32.mxu0 %vm239_vm1, %v6115_v5  ;;  %5161 = vmatprep.subr.msk.mxu1 %vm336_vm0, %v5602_v1  ;;  %v4238_v61 = vld [vmem:[%s5623_s9 + $0x1a0] sm:$0xff] }
  0xa2   : > { %4817 = vmatmul.mubr.msk.f32.gmra.mrb[2].mxu1 %vm239_vm1, %v5750_v25  ;;  %5041 = vmatmul.mubr.msk.f32.gmra.mrb[18].mxu0 %vm239_vm1, %v6126_v7  ;;  %v6248_v25 = vld [vmem:[%s5623_s9 + $0x188] sm:$0xff] }
  0xa3   : > { %4819 = vmatprep.mubr.msk.f32.mxu1 %vm239_vm1, %v5756_v27  ;;  %5043 = vmatprep.mubr.msk.f32.mxu0 %vm239_vm1, %v6129_v10 }
  0xa6   : > { %4820 = vmatmul.mubr.msk.f32.gmra.mrb[4].mxu1 %vm239_vm1, %v5774_v30  ;;  %5044 = vmatmul.mubr.msk.f32.gmra.mrb[20].mxu0 %vm239_vm1, %v6140_v57 }
  0xa7   : > { %4822 = vmatprep.mubr.msk.f32.mxu1 %vm239_vm1, %v5782_v32  ;;  %5046 = vmatprep.mubr.msk.f32.mxu0 %vm239_vm1, %v6143_v51 }
  0xaa   : > { %4823 = vmatmul.mubr.msk.f32.gmra.mrb[6].mxu1 %vm239_vm1, %v5798_v34  ;;  %5047 = vmatmul.mubr.msk.f32.gmra.mrb[22].mxu0 %vm239_vm1, %v6154_v47 }
  0xab   : > { %4825 = vmatprep.mubr.msk.f32.mxu1 %vm239_vm1, %v5804_v36  ;;  %5049 = vmatprep.mubr.msk.f32.mxu0 %vm239_vm1, %v6157_v43 }
  0xae   : > { %4826 = vmatmul.mubr.msk.f32.gmra.mrb[8].mxu1 %vm239_vm1, %v5818_v38  ;;  %5050 = vmatmul.mubr.msk.f32.gmra.mrb[24].mxu0 %vm239_vm1, %v6168_v39 }
  0xaf   : > { %4828 = vmatprep.mubr.msk.f32.mxu1 %vm239_vm1, %v5824_v40  ;;  %5052 = vmatprep.mubr.msk.f32.mxu0 %vm239_vm1, %v6171_v35 }
  0xb2   : > { %4829 = vmatmul.mubr.msk.f32.gmra.mrb[10].mxu1 %vm239_vm1, %v5838_v42  ;;  %5053 = vmatmul.mubr.msk.f32.gmra.mrb[26].mxu0 %vm239_vm1, %v6182_v62 }
  0xb3   : > { %4831 = vmatprep.mubr.msk.f32.mxu1 %vm239_vm1, %v5844_v44  ;;  %5055 = vmatprep.mubr.msk.f32.mxu0 %vm239_vm1, %v6237_v24 }
  0xb6   : > { %4832 = vmatmul.mubr.msk.f32.gmra.mrb[12].mxu1 %vm239_vm1, %v5858_v46  ;;  %5056 = vmatmul.mubr.msk.f32.gmra.mrb[28].mxu0 %vm239_vm1, %v6248_v25 }
  0xb7   : > { %4834 = vmatprep.mubr.msk.f32.mxu1 %vm239_vm1, %v5864_v48  ;;  %5058 = vmatprep.mubr.msk.f32.mxu0 %vm239_vm1, %v4237_v33  ;;  %v6883_v33 = vld [vmem:[#allocation13_spill] sm:$0xff] }
  0xba   : > { %4835 = vmatmul.mubr.msk.f32.gmra.mrb[14].mxu1 %vm239_vm1, %v5878_v50  ;;  %5059 = vmatmul.mubr.msk.f32.gmra.mrb[30].mxu0 %vm239_vm1, %v4238_v61  ;;  %v6884_v61 = vld [vmem:[#allocation26_spill] sm:$0xff] }
  0xbb   : > { %4837 = vmatprep.mubr.msk.f32.mxu1 %vm239_vm1, %v5884_v52  ;;  %5063 = vmatprep.mubr.msk.f32.mxu0 %vm239_vm1, %v5632_v8  ;;  %v6866_v8 = vld [vmem:[#allocation30_spill] sm:$0xff] }
  0xbe   : > { %4838 = vmatmul.mubr.msk.f32.gmra.mrb[16].mxu1 %vm239_vm1, %v5898_v54  ;;  %5064 = vmatmul.mubr.msk.f32.vlgmr.msra.gmra.mrb[0].mxu0 %vm239_vm1, %v5647_v11  ;;  %v6867_v11 = vld [vmem:[#allocation5_spill] sm:$0xff] }
  0xbf   : > { %5112 = vmatpush3.msk.msra.mxu0 %vm336_vm0, %v6083_v37  ;;  %4840 = vmatprep.mubr.msk.f32.mxu1 %vm239_vm1, %v5902_v56  ;;  %v6881_v37 = vld [vmem:[#allocation12_spill] sm:$0xff] }
  0xc0   : > { %5066 = vmatprep.mubr.msk.f32.mxu0 %vm239_vm1, %v5653_v12  ;;  %v6868_v12 = vld [vmem:[#allocation18_spill] sm:$0xff] }
  0xc2   : > { %4841 = vmatmul.mubr.msk.f32.gmra.mrb[18].mxu1 %vm239_vm1, %v5913_v58  ;;  %5067 = vmatmul.mubr.msk.f32.gmra.mrb[2].mxu0 %vm239_vm1, %v5666_v13  ;;  %v6869_v13 = vld [vmem:[#allocation6_spill] sm:$0xff] }
  0xc3   : > { %4843 = vmatprep.mubr.msk.f32.mxu1 %vm239_vm1, %v5919_v60  ;;  %5069 = vmatprep.mubr.msk.f32.mxu0 %vm239_vm1, %v5669_v14  ;;  %v6870_v14 = vld [vmem:[#allocation19_spill] sm:$0xff] }
  0xc6   : > { %4844 = vmatmul.mubr.msk.f32.gmra.mrb[20].mxu1 %vm239_vm1, %v5937_v63  ;;  %5070 = vmatmul.mubr.msk.f32.gmra.mrb[4].mxu0 %vm239_vm1, %v5680_v15  ;;  %v6871_v15 = vld [vmem:[#allocation7_spill] sm:$0xff] }
  0xc7   : > { %4846 = vmatprep.mubr.msk.f32.mxu1 %vm239_vm1, %v5945_v2  ;;  %5072 = vmatprep.mubr.msk.f32.mxu0 %vm239_vm1, %v5683_v16  ;;  %v6872_v16 = vld [vmem:[#allocation20_spill] sm:$0xff] }
  0xca   : > { %4847 = vmatmul.mubr.msk.f32.gmra.mrb[22].mxu1 %vm239_vm1, %v5961_v4  ;;  %5073 = vmatmul.mubr.msk.f32.gmra.mrb[6].mxu0 %vm239_vm1, %v5694_v17  ;;  %v6873_v17 = vld [vmem:[#allocation8_spill] sm:$0xff] }
  0xcb   : > { %4849 = vmatprep.mubr.msk.f32.mxu1 %vm239_vm1, %v5967_v6  ;;  %5075 = vmatprep.mubr.msk.f32.mxu0 %vm239_vm1, %v5697_v18  ;;  %v6874_v18 = vld [vmem:[#allocation21_spill] sm:$0xff] }
  0xce   : > { %4850 = vmatmul.mubr.msk.f32.gmra.mrb[24].mxu1 %vm239_vm1, %v5981_v9  ;;  %5076 = vmatmul.mubr.msk.f32.gmra.mrb[8].mxu0 %vm239_vm1, %v5708_v19  ;;  %v6875_v19 = vld [vmem:[#allocation9_spill] sm:$0xff] }
  0xcf   : > { %4852 = vmatprep.mubr.msk.f32.mxu1 %vm239_vm1, %v5987_v55  ;;  %5078 = vmatprep.mubr.msk.f32.mxu0 %vm239_vm1, %v5711_v20  ;;  %v6876_v20 = vld [vmem:[#allocation22_spill] sm:$0xff] }
  0xd2   : > { %4853 = vmatmul.mubr.msk.f32.gmra.mrb[26].mxu1 %vm239_vm1, %v6001_v53  ;;  %5079 = vmatmul.mubr.msk.f32.gmra.mrb[10].mxu0 %vm239_vm1, %v5722_v21  ;;  %v6877_v21 = vld [vmem:[#allocation10_spill] sm:$0xff] }
  0xd3   : > { %4855 = vmatprep.mubr.msk.f32.mxu1 %vm239_vm1, %v6007_v49  ;;  %5081 = vmatprep.mubr.msk.f32.mxu0 %vm239_vm1, %v5725_v22  ;;  %v6879_v22 = vld [vmem:[#allocation11_spill] sm:$0xff] }
  0xd6   : > { %4856 = vmatmul.mubr.msk.f32.gmra.mrb[28].mxu1 %vm239_vm1, %v6021_v45  ;;  %5082 = vmatmul.mubr.msk.f32.gmra.mrb[12].mxu0 %vm239_vm1, %v5736_v23  ;;  %v6880_v23 = vld [vmem:[#allocation24_spill] sm:$0xff] }
  0xd7   : > { %4858 = vmatprep.mubr.msk.f32.mxu1 %vm239_vm1, %v6027_v41  ;;  %5084 = vmatprep.mubr.msk.f32.mxu0 %vm239_vm1, %v5753_v26 }
  0xda   : > { %4859 = vmatmul.mubr.msk.f32.gmra.mrb[30].mxu1 %vm239_vm1, %v6866_v8  ;;  %5085 = vmatmul.mubr.msk.f32.gmra.mrb[14].mxu0 %vm239_vm1, %v6867_v11  ;;  %v6893_v8 = vld [vmem:[#allocation33_spill] sm:$0xff] }
  0xdb   : > { %4863 = vmatprep.mubr.msk.f32.mxu1 %vm239_vm1, %v6868_v12  ;;  %5087 = vmatprep.mubr.msk.f32.mxu0 %vm239_vm1, %v6869_v13  ;;  %v6885_v12 = vld [vmem:[#allocation14_spill] sm:$0xff] }
  0xde   : > { %4864 = vmatmul.mubr.msk.f32.vlgmr.msra.gmra.mrb[0].mxu1 %vm239_vm1, %v6870_v14  ;;  %5088 = vmatmul.mubr.msk.f32.gmra.mrb[16].mxu0 %vm239_vm1, %v6871_v15  ;;  %v6886_v14 = vld [vmem:[#allocation27_spill] sm:$0xff] }
  0xdf   : > { %5162 = vmatpush3.msk.msra.mxu1 %vm336_vm0, %v5602_v1  ;;  %4866 = vmatprep.mubr.msk.f32.mxu1 %vm239_vm1, %v6872_v16  ;;  %v6878_v1 = vld [vmem:[#allocation23_spill] sm:$0xff] }
  0xe0   : > { %5090 = vmatprep.mubr.msk.f32.mxu0 %vm239_vm1, %v6873_v17  ;;  %v6887_v16 = vld [vmem:[#allocation15_spill] sm:$0xff] }
  0xe2   : > { %4867 = vmatmul.mubr.msk.f32.gmra.mrb[2].mxu1 %vm239_vm1, %v6874_v18  ;;  %5091 = vmatmul.mubr.msk.f32.gmra.mrb[18].mxu0 %vm239_vm1, %v6875_v19  ;;  %v6888_v18 = vld [vmem:[#allocation28_spill] sm:$0xff] }
  0xe3   : > { %4869 = vmatprep.mubr.msk.f32.mxu1 %vm239_vm1, %v6876_v20  ;;  %5093 = vmatprep.mubr.msk.f32.mxu0 %vm239_vm1, %v6877_v21  ;;  %v6889_v20 = vld [vmem:[#allocation16_spill] sm:$0xff] }
  0xe6   : > { %4870 = vmatmul.mubr.msk.f32.gmra.mrb[4].mxu1 %vm239_vm1, %v6878_v1  ;;  %5094 = vmatmul.mubr.msk.f32.gmra.mrb[20].mxu0 %vm239_vm1, %v6879_v22  ;;  %v6375_v1 = vld [vmem:[%s5623_s9 + $0x181] sm:$0xff] }
  0xe7   : > { %4872 = vmatprep.mubr.msk.f32.mxu1 %vm239_vm1, %v6880_v23  ;;  %5096 = vmatprep.mubr.msk.f32.mxu0 %vm239_vm1, %v6881_v37  ;;  %v6890_v23 = vld [vmem:[#allocation29_spill] sm:$0xff] }
  0xea   : > { %4873 = vmatmul.mubr.msk.f32.gmra.mrb[6].mxu1 %vm239_vm1, %v6882_v3  ;;  %5097 = vmatmul.mubr.msk.f32.gmra.mrb[22].mxu0 %vm239_vm1, %v6883_v33  ;;  %v6891_v3 = vld [vmem:[#allocation17_spill] sm:$0xff] }
  0xeb   : > { %4875 = vmatprep.mubr.msk.f32.mxu1 %vm239_vm1, %v6884_v61  ;;  %5099 = vmatprep.mubr.msk.f32.mxu0 %vm239_vm1, %v6885_v12  ;;  %v6892_v61 = vld [vmem:[#allocation31_spill] sm:$0xff] }
  0xee   : > { %4876 = vmatmul.mubr.msk.f32.gmra.mrb[8].mxu1 %vm239_vm1, %v6886_v14  ;;  %5100 = vmatmul.mubr.msk.f32.gmra.mrb[24].mxu0 %vm239_vm1, %v6887_v16  ;;  %v6386_v14 = vld [vmem:[%s5623_s9 + $0x189] sm:$0xff] }
  0xef   : > { %4878 = vmatprep.mubr.msk.f32.mxu1 %vm239_vm1, %v6888_v18  ;;  %5102 = vmatprep.mubr.msk.f32.mxu0 %vm239_vm1, %v6889_v20  ;;  %v4303_v18 = vld [vmem:[%s5623_s9 + $0x199] sm:$0xff] }
  0xf2   : > { %4879 = vmatmul.mubr.msk.f32.gmra.mrb[10].mxu1 %vm239_vm1, %v6890_v23  ;;  %5103 = vmatmul.mubr.msk.f32.gmra.mrb[26].mxu0 %vm239_vm1, %v6891_v3  ;;  %v4304_v23 = vld [vmem:[%s5623_s9 + $0x1a1] sm:$0xff]  ;;  %v6894_v3 = vld [vmem:[#allocation35_spill] sm:$0xff] }
  0xf3   : > { %4881 = vmatprep.mubr.msk.f32.mxu1 %vm239_vm1, %v6892_v61  ;;  %5105 = vmatprep.mubr.msk.f32.mxu0 %vm239_vm1, %v6375_v1 }
  0xf6   : > { %4882 = vmatmul.mubr.msk.f32.gmra.mrb[12].mxu1 %vm239_vm1, %v6893_v8  ;;  %5106 = vmatmul.mubr.msk.f32.gmra.mrb[28].mxu0 %vm239_vm1, %v6386_v14 }
  0xf7   : > { %4884 = vmatprep.mubr.msk.f32.mxu1 %vm239_vm1, %v6064_v59  ;;  %5108 = vmatprep.mubr.msk.f32.mxu0 %vm239_vm1, %v4303_v18 }
  0xfa   : > { %4885 = vmatmul.mubr.msk.f32.gmra.mrb[14].mxu1 %vm239_vm1, %v6894_v3  ;;  %5109 = vmatmul.mubr.msk.f32.gmra.mrb[30].mxu0 %vm239_vm1, %v4304_v23 }
  0xfb   : > { %4887 = vmatprep.mubr.msk.f32.mxu1 %vm239_vm1, %v6078_v29  ;;  %5113 = vmatprep.mubr.msk.f32.mxu0 %vm239_vm1, %v5756_v27  ;;  %v6896_v27 = vld [vmem:[#allocation32_spill] sm:$0xff] }
  0xfc   : > { %v4369_v29 = vld [vmem:[%s5623_s9 + $0x19a] sm:$0xff] }
  0xfe   : > { %4888 = vmatmul.mubr.msk.f32.gmra.mrb[16].mxu1 %vm239_vm1, %v6094_v31  ;;  %5114 = vmatmul.mubr.msk.f32.vlgmr.msra.gmra.mrb[0].mxu0 %vm239_vm1, %v5774_v30  ;;  %v6897_v30 = vld [vmem:[#allocation17_spill] sm:$0xff]  ;;  %v6898_v31 = vld [vmem:[#allocation34_spill] sm:$0xff] }
  0xff   : > { %4890 = vmatprep.mubr.msk.f32.mxu1 %vm239_vm1, %v6099_v0  ;;  %5116 = vmatprep.mubr.msk.f32.mxu0 %vm239_vm1, %v5782_v32  ;;  %v4370_v32 = vld [vmem:[%s5623_s9 + $0x1a2] sm:$0xff] }
 0x102   : > { %4891 = vmatmul.mubr.msk.f32.gmra.mrb[18].mxu1 %vm239_vm1, %v6112_v28  ;;  %5117 = vmatmul.mubr.msk.f32.gmra.mrb[2].mxu0 %vm239_vm1, %v5798_v34 }
 0x103   : > { %4893 = vmatprep.mubr.msk.f32.mxu1 %vm239_vm1, %v6115_v5  ;;  %5119 = vmatprep.mubr.msk.f32.mxu0 %vm239_vm1, %v5804_v36 }
 0x106   : > { %4894 = vmatmul.mubr.msk.f32.gmra.mrb[20].mxu1 %vm239_vm1, %v6126_v7  ;;  %5120 = vmatmul.mubr.msk.f32.gmra.mrb[4].mxu0 %vm239_vm1, %v5818_v38 }
 0x107   : > { %4896 = vmatprep.mubr.msk.f32.mxu1 %vm239_vm1, %v6129_v10  ;;  %5122 = vmatprep.mubr.msk.f32.mxu0 %vm239_vm1, %v5824_v40 }
 0x10a   : > { %4897 = vmatmul.mubr.msk.f32.gmra.mrb[22].mxu1 %vm239_vm1, %v6140_v57  ;;  %5123 = vmatmul.mubr.msk.f32.gmra.mrb[6].mxu0 %vm239_vm1, %v5838_v42 }
 0x10b   : > { %4899 = vmatprep.mubr.msk.f32.mxu1 %vm239_vm1, %v6143_v51  ;;  %5125 = vmatprep.mubr.msk.f32.mxu0 %vm239_vm1, %v5844_v44  ;;  %v6547_v51 = vld [vmem:[%s6786_s2] ss:$0 sm:$0xff] }
 0x10e   : > { %4900 = vmatmul.mubr.msk.f32.gmra.mrb[24].mxu1 %vm239_vm1, %v6154_v47  ;;  %5126 = vmatmul.mubr.msk.f32.gmra.mrb[8].mxu0 %vm239_vm1, %v5858_v46 }
 0x10f   : > { %4902 = vmatprep.mubr.msk.f32.mxu1 %vm239_vm1, %v6157_v43  ;;  %5128 = vmatprep.mubr.msk.f32.mxu0 %vm239_vm1, %v5864_v48 }
 0x112   : > { %4903 = vmatmul.mubr.msk.f32.gmra.mrb[26].mxu1 %vm239_vm1, %v6168_v39  ;;  %5129 = vmatmul.mubr.msk.f32.gmra.mrb[10].mxu0 %vm239_vm1, %v5878_v50 }
 0x113   : > { %4905 = vmatprep.mubr.msk.f32.mxu1 %vm239_vm1, %v6171_v35  ;;  %5131 = vmatprep.mubr.msk.f32.mxu0 %vm239_vm1, %v5884_v52 }
 0x116   : > { %4906 = vmatmul.mubr.msk.f32.gmra.mrb[28].mxu1 %vm239_vm1, %v6182_v62  ;;  %5132 = vmatmul.mubr.msk.f32.gmra.mrb[12].mxu0 %vm239_vm1, %v5898_v54 }
 0x117   : > { %4908 = vmatprep.mubr.msk.f32.mxu1 %vm239_vm1, %v6237_v24  ;;  %5134 = vmatprep.mubr.msk.f32.mxu0 %vm239_vm1, %v5902_v56  ;;  %v6553_v56 = vld [vmem:[%s6786_s2 + $0x1] ss:$0 sm:$0xff] }
 0x11a   : > { %4909 = vmatmul.mubr.msk.f32.gmra.mrb[30].mxu1 %vm239_vm1, %v6248_v25  ;;  %5135 = vmatmul.mubr.msk.f32.gmra.mrb[14].mxu0 %vm239_vm1, %v5913_v58 }
 0x11b   : > { %4937 = vmatprep.mubr.msk.f32.mxu1 %vm239_vm1, %v5753_v26  ;;  %5137 = vmatprep.mubr.msk.f32.mxu0 %vm239_vm1, %v5919_v60  ;;  %v6895_v26 = vld [vmem:[#allocation30_spill] sm:$0xff]  ;;  %v6561_v60 = vld [vmem:[%s6786_s2 + $0x2] ss:$0 sm:$0xff] }
 0x11e   : > { %4938 = vmatmul.mubr.msk.f32.vlgmr.msra.gmra.mrb[16].mxu1 %vm239_vm1, %v6867_v11  ;;  %5138 = vmatmul.mubr.msk.f32.gmra.mrb[16].mxu0 %vm239_vm1, %v5937_v63 }
 0x11f   : > { %4940 = vmatprep.mubr.msk.f32.mxu1 %vm239_vm1, %v6869_v13  ;;  %5140 = vmatprep.mubr.msk.f32.mxu0 %vm239_vm1, %v5945_v2 }
 0x122   : > { %4941 = vmatmul.mubr.msk.f32.gmra.mrb[18].mxu1 %vm239_vm1, %v6871_v15  ;;  %5141 = vmatmul.mubr.msk.f32.gmra.mrb[18].mxu0 %vm239_vm1, %v5961_v4 }
 0x123   : > { %4943 = vmatprep.mubr.msk.f32.mxu1 %vm239_vm1, %v6873_v17  ;;  %5143 = vmatprep.mubr.msk.f32.mxu0 %vm239_vm1, %v5967_v6 }
 0x126   : > { %4944 = vmatmul.mubr.msk.f32.gmra.mrb[20].mxu1 %vm239_vm1, %v6875_v19  ;;  %5144 = vmatmul.mubr.msk.f32.gmra.mrb[20].mxu0 %vm239_vm1, %v5981_v9 }
 0x127   : > { %4946 = vmatprep.mubr.msk.f32.mxu1 %vm239_vm1, %v6877_v21  ;;  %5146 = vmatprep.mubr.msk.f32.mxu0 %vm239_vm1, %v5987_v55 }
 0x12a   : > { %4947 = vmatmul.mubr.msk.f32.gmra.mrb[22].mxu1 %vm239_vm1, %v6879_v22  ;;  %5147 = vmatmul.mubr.msk.f32.gmra.mrb[22].mxu0 %vm239_vm1, %v6001_v53 }
 0x12b   : > { %4949 = vmatprep.mubr.msk.f32.mxu1 %vm239_vm1, %v6881_v37  ;;  %5149 = vmatprep.mubr.msk.f32.mxu0 %vm239_vm1, %v6007_v49 }
 0x12e   : > { %4950 = vmatmul.mubr.msk.f32.gmra.mrb[24].mxu1 %vm239_vm1, %v6883_v33  ;;  %5150 = vmatmul.mubr.msk.f32.gmra.mrb[24].mxu0 %vm239_vm1, %v6021_v45 }
 0x12f   : > { %4952 = vmatprep.mubr.msk.f32.mxu1 %vm239_vm1, %v6885_v12  ;;  %5152 = vmatprep.mubr.msk.f32.mxu0 %vm239_vm1, %v6027_v41 }
 0x132   : > { %4953 = vmatmul.mubr.msk.f32.gmra.mrb[26].mxu1 %vm239_vm1, %v6887_v16  ;;  %5153 = vmatmul.mubr.msk.f32.gmra.mrb[26].mxu0 %vm239_vm1, %v6895_v26 }
 0x133   : > { %4955 = vmatprep.mubr.msk.f32.mxu1 %vm239_vm1, %v6889_v20  ;;  %5155 = vmatprep.mubr.msk.f32.mxu0 %vm239_vm1, %v6896_v27 }
 0x136   : > { %4956 = vmatmul.mubr.msk.f32.gmra.mrb[28].mxu1 %vm239_vm1, %v6897_v30  ;;  %5156 = vmatmul.mubr.msk.f32.gmra.mrb[28].mxu0 %vm239_vm1, %v6898_v31 }
 0x137   : > { %4958 = vmatprep.mubr.msk.f32.mxu1 %vm239_vm1, %v6375_v1  ;;  %5158 = vmatprep.mubr.msk.f32.mxu0 %vm239_vm1, %v4369_v29 }
 0x13a   : > { %4959 = vmatmul.mubr.msk.f32.gmra.mrb[30].mxu1 %vm239_vm1, %v6386_v14  ;;  %5159 = vmatmul.mubr.msk.f32.gmra.mrb[30].mxu0 %vm239_vm1, %v4370_v32 }
 0x1b1   : > { %v4865_v34 = vpop.f32.mrb[0].mxu1 }
 0x1b2   : > { %v1479_v35 = vpop.f32.mrb[1].mxu1 }
 0x1b5   : > { %v4868_v36 = vpop.f32.mrb[2].mxu1 }
 0x1b6   : > { %v1489_v38 = vpop.f32.mrb[3].mxu1 }
 0x1b9   : > { %v4871_v39 = vpop.f32.mrb[4].mxu1 }
 0x1ba   : > { %v1499_v40 = vpop.f32.mrb[5].mxu1 }
 0x1bd   : > { %v4874_v41 = vpop.f32.mrb[6].mxu1 }
 0x1be   : > { %v1509_v42 = vpop.f32.mrb[7].mxu1 }
 0x1c1   : > { %v6528_v43 = vpop.f32.mrb[8].mxu1 }
 0x1c2   : > { %v6530_v44 = vpop.f32.mrb[9].mxu1 }
 0x1c5   : > { %v6532_v45 = vpop.f32.mrb[10].mxu1 }
 0x1c6   : > { %v6534_v46 = vpop.f32.mrb[11].mxu1 }
 0x1c9   : > { %v6536_v47 = vpop.f32.mrb[12].mxu1 }
 0x1ca   : > { %v6538_v48 = vpop.f32.mrb[13].mxu1 }
 0x1cd   : > { %v6540_v49 = vpop.f32.mrb[14].mxu1 }
 0x1ce   : > { %v6542_v50 = vpop.f32.mrb[15].mxu1 }
 0x1d1   : > { %v5115_v52 = vpop.f32.mrb[0].mxu0 }
 0x1d2   : > { %v5163_v53 = vadd.f32 %v5115_v52, %v4865_v34  ;;  %v3430_v54 = vpop.f32.mrb[1].mxu0 }
 0x1d3   : > { %v5164_v58 = vadd.f32 %v3430_v54, %v1479_v35 }
 0x1d4   : > { %v3626_v59 = vmul.f32 %v5163_v53, %v6547_v51 }
 0x1d5   : > { %v3625_v62 = vmul.f32 %v5164_v58, %v6547_v51  ;;  %v5118_v63 = vpop.f32.mrb[2].mxu0 }
 0x1d6   : > { %v3662_v0 = vadd.f32 %v6553_v56, %v3626_v59  ;;  %v5165_v2 = vadd.f32 %v5118_v63, %v4868_v36  ;;  %v3440_v4 = vpop.f32.mrb[3].mxu0 }
 0x1d7   : > { %v3661_v5 = vadd.f32 %v6553_v56, %v3625_v62  ;;  %v5166_v6 = vadd.f32 %v3440_v4, %v1489_v38 }
 0x1d8   : > { %vm3694_vm2 = vcmp.ge.f32.partialorder %v3662_v0, 0.0  ;;  %v3730_v7 = vmul.f32 %v6561_v60, %v3662_v0  ;;  %v3628_v9 = vmul.f32 %v5165_v2, %v6547_v51 }
 0x1d9   : > { %vm3693_vm4 = vcmp.ge.f32.partialorder %v3661_v5, 0.0  ;;  %v3729_v10 = vmul.f32 %v6561_v60, %v3661_v5  ;;  %v3627_v55 = vmul.f32 %v5166_v6, %v6547_v51  ;;  %v5121_v57 = vpop.f32.mrb[4].mxu0 }
 0x1da   : > { %v3762_v28 = vsel %vm3694_vm2, %v3662_v0, %v3730_v7  ;;  %v3664_v24 = vadd.f32 %v6553_v56, %v3628_v9  ;;  %v5167_v25 = vadd.f32 %v5121_v57, %v4871_v39  ;;  %v3450_v8 = vpop.f32.mrb[5].mxu0 }
 0x1db   : > { %3795 = vst.msk [vmem:[%s6571_s10 + $0x8] sm:$0xff] %vm3793_vm3, %v3762_v28  ;;  %v3761_v11 = vsel %vm3693_vm4, %v3661_v5, %v3729_v10  ;;  %v3663_v13 = vadd.f32 %v6553_v56, %v3627_v55  ;;  %v5168_v15 = vadd.f32 %v3450_v8, %v1499_v40 }
 0x1dc   : > { %3794 = vst.msk [vmem:[%s6571_s10] sm:$0xff] %vm3793_vm3, %v3761_v11  ;;  %vm3696_vm5 = vcmp.ge.f32.partialorder %v3664_v24, 0.0  ;;  %v3732_v17 = vmul.f32 %v6561_v60, %v3664_v24  ;;  %v3630_v19 = vmul.f32 %v5167_v25, %v6547_v51 }
 0x1dd   : > { %vm3695_vm6 = vcmp.ge.f32.partialorder %v3663_v13, 0.0  ;;  %v3731_v21 = vmul.f32 %v6561_v60, %v3663_v13  ;;  %v3629_v22 = vmul.f32 %v5168_v15, %v6547_v51  ;;  %v5124_v37 = vpop.f32.mrb[6].mxu0 }
 0x1de   : > { %v3764_v33 = vsel %vm3696_vm5, %v3664_v24, %v3732_v17  ;;  %v3666_v12 = vadd.f32 %v6553_v56, %v3630_v19  ;;  %v5169_v16 = vadd.f32 %v5124_v37, %v4874_v41  ;;  %v3460_v20 = vpop.f32.mrb[7].mxu0 }
 0x1df   : > { %3797 = vst.msk [vmem:[%s6571_s10 + $0x18] sm:$0xff] %vm3793_vm3, %v3764_v33  ;;  %v3763_v1 = vsel %vm3695_vm6, %v3663_v13, %v3731_v21  ;;  %v3665_v3 = vadd.f32 %v6553_v56, %v3629_v22  ;;  %v5170_v61 = vadd.f32 %v3460_v20, %v1509_v42 }
 0x1e0   : > { %3796 = vst.msk [vmem:[%s6571_s10 + $0x10] sm:$0xff] %vm3793_vm3, %v3763_v1  ;;  %vm3698_vm7 = vcmp.ge.f32.partialorder %v3666_v12, 0.0  ;;  %v3734_v14 = vmul.f32 %v6561_v60, %v3666_v12  ;;  %v3632_v18 = vmul.f32 %v5169_v16, %v6547_v51 }
 0x1e1   : > { %vm3697_vm8 = vcmp.ge.f32.partialorder %v3665_v3, 0.0  ;;  %v3733_v23 = vmul.f32 %v6561_v60, %v3665_v3  ;;  %v3631_v26 = vmul.f32 %v5170_v61, %v6547_v51  ;;  %v5127_v27 = vpop.f32.mrb[8].mxu0 }
 0x1e2   : > { %v3766_v29 = vsel %vm3698_vm7, %v3666_v12, %v3734_v14  ;;  %v3668_v30 = vadd.f32 %v6553_v56, %v3632_v18  ;;  %v5171_v31 = vadd.f32 %v5127_v27, %v6528_v43  ;;  %v3470_v32 = vpop.f32.mrb[9].mxu0 }
 0x1e3   : > { %3799 = vst.msk [vmem:[%s6571_s10 + $0x28] sm:$0xff] %vm3793_vm3, %v3766_v29  ;;  %v3765_v34 = vsel %vm3697_vm8, %v3665_v3, %v3733_v23  ;;  %v3667_v35 = vadd.f32 %v6553_v56, %v3631_v26  ;;  %v5172_v36 = vadd.f32 %v3470_v32, %v6530_v44 }
 0x1e4   : > { %3798 = vst.msk [vmem:[%s6571_s10 + $0x20] sm:$0xff] %vm3793_vm3, %v3765_v34  ;;  %vm3700_vm9 = vcmp.ge.f32.partialorder %v3668_v30, 0.0  ;;  %v3736_v38 = vmul.f32 %v6561_v60, %v3668_v30  ;;  %v3634_v39 = vmul.f32 %v5171_v31, %v6547_v51 }
 0x1e5   : > { %vm3699_vm10 = vcmp.ge.f32.partialorder %v3667_v35, 0.0  ;;  %v3735_v40 = vmul.f32 %v6561_v60, %v3667_v35  ;;  %v3633_v41 = vmul.f32 %v5172_v36, %v6547_v51  ;;  %v5130_v42 = vpop.f32.mrb[10].mxu0 }
 0x1e6   : > { %v3768_v43 = vsel %vm3700_vm9, %v3668_v30, %v3736_v38  ;;  %v3670_v52 = vadd.f32 %v6553_v56, %v3634_v39  ;;  %v5173_v53 = vadd.f32 %v5130_v42, %v6532_v45  ;;  %v3480_v44 = vpop.f32.mrb[11].mxu0 }
 0x1e7   : > { %3801 = vst.msk [vmem:[%s6571_s10 + $0x38] sm:$0xff] %vm3793_vm3, %v3768_v43  ;;  %v3767_v54 = vsel %vm3699_vm10, %v3667_v35, %v3735_v40  ;;  %v3669_v58 = vadd.f32 %v6553_v56, %v3633_v41  ;;  %v5174_v59 = vadd.f32 %v3480_v44, %v6534_v46 }
 0x1e8   : > { %3800 = vst.msk [vmem:[%s6571_s10 + $0x30] sm:$0xff] %vm3793_vm3, %v3767_v54  ;;  %vm3702_vm11 = vcmp.ge.f32.partialorder %v3670_v52, 0.0  ;;  %v3738_v62 = vmul.f32 %v6561_v60, %v3670_v52  ;;  %v3636_v63 = vmul.f32 %v5173_v53, %v6547_v51 }
 0x1e9   : > { %vm3701_vm12 = vcmp.ge.f32.partialorder %v3669_v58, 0.0  ;;  %v3737_v45 = vmul.f32 %v6561_v60, %v3669_v58  ;;  %v3635_v0 = vmul.f32 %v5174_v59, %v6547_v51  ;;  %v5133_v2 = vpop.f32.mrb[12].mxu0 }
 0x1ea   : > { %v3770_v4 = vsel %vm3702_vm11, %v3670_v52, %v3738_v62  ;;  %v3672_v5 = vadd.f32 %v6553_v56, %v3636_v63  ;;  %v5175_v6 = vadd.f32 %v5133_v2, %v6536_v47  ;;  %v3490_v46 = vpop.f32.mrb[13].mxu0 }
 0x1eb   : > { %3803 = vst.msk [vmem:[%s6571_s10 + $0x48] sm:$0xff] %vm3793_vm3, %v3770_v4  ;;  %v3769_v7 = vsel %vm3701_vm12, %v3669_v58, %v3737_v45  ;;  %v3671_v9 = vadd.f32 %v6553_v56, %v3635_v0  ;;  %v5176_v10 = vadd.f32 %v3490_v46, %v6538_v48 }
 0x1ec   : > { %3802 = vst.msk [vmem:[%s6571_s10 + $0x40] sm:$0xff] %vm3793_vm3, %v3769_v7  ;;  %vm3704_vm13 = vcmp.ge.f32.partialorder %v3672_v5, 0.0  ;;  %v3740_v55 = vmul.f32 %v6561_v60, %v3672_v5  ;;  %v3638_v57 = vmul.f32 %v5175_v6, %v6547_v51 }
 0x1ed   : > { %vm3703_vm14 = vcmp.ge.f32.partialorder %v3671_v9, 0.0  ;;  %v3739_v47 = vmul.f32 %v6561_v60, %v3671_v9  ;;  %v3637_v28 = vmul.f32 %v5176_v10, %v6547_v51  ;;  %v5136_v24 = vpop.f32.mrb[14].mxu0 }
 0x1ee   : > { %v3772_v25 = vsel %vm3704_vm13, %v3672_v5, %v3740_v55  ;;  %v3674_v8 = vadd.f32 %v6553_v56, %v3638_v57  ;;  %v5177_v11 = vadd.f32 %v5136_v24, %v6540_v49  ;;  %v3500_v48 = vpop.f32.mrb[15].mxu0 }
 0x1ef   : > { %3805 = vst.msk [vmem:[%s6571_s10 + $0x58] sm:$0xff] %vm3793_vm3, %v3772_v25  ;;  %v3771_v13 = vsel %vm3703_vm14, %v3671_v9, %v3739_v47  ;;  %v3673_v15 = vadd.f32 %v6553_v56, %v3637_v28  ;;  %v5178_v17 = vadd.f32 %v3500_v48, %v6542_v50 }
 0x1f0   : > { %3804 = vst.msk [vmem:[%s6571_s10 + $0x50] sm:$0xff] %vm3793_vm3, %v3771_v13  ;;  %vm3706_vm15 = vcmp.ge.f32.partialorder %v3674_v8, 0.0  ;;  %v3742_v19 = vmul.f32 %v6561_v60, %v3674_v8  ;;  %v3640_v21 = vmul.f32 %v5177_v11, %v6547_v51 }
 0x1f1   : > { %vm3705_vm0 = vcmp.ge.f32.partialorder %v3673_v15, 0.0  ;;  %v3741_v49 = vmul.f32 %v6561_v60, %v3673_v15  ;;  %v3639_v22 = vmul.f32 %v5178_v17, %v6547_v51  ;;  %v4939_v37 = vpop.f32.mrb[16].mxu1  ;;  %v5139_v33 = vpop.f32.mrb[16].mxu0 }
 0x1f2   : > { %v3774_v12 = vsel %vm3706_vm15, %v3674_v8, %v3742_v19  ;;  %v3676_v16 = vadd.f32 %v6553_v56, %v3640_v21  ;;  %v5179_v20 = vadd.f32 %v5139_v33, %v4939_v37  ;;  %v1949_v50 = vpop.f32.mrb[17].mxu1  ;;  %v3510_v1 = vpop.f32.mrb[17].mxu0 }
 0x1f3   : > { %3807 = vst.msk [vmem:[%s6571_s10 + $0x68] sm:$0xff] %vm3793_vm3, %v3774_v12  ;;  %v3773_v3 = vsel %vm3705_vm0, %v3673_v15, %v3741_v49  ;;  %v3675_v61 = vadd.f32 %v6553_v56, %v3639_v22  ;;  %v5180_v14 = vadd.f32 %v3510_v1, %v1949_v50 }
 0x1f4   : > { %3806 = vst.msk [vmem:[%s6571_s10 + $0x60] sm:$0xff] %vm3793_vm3, %v3773_v3  ;;  %vm3708_vm1 = vcmp.ge.f32.partialorder %v3676_v16, 0.0  ;;  %v3744_v18 = vmul.f32 %v6561_v60, %v3676_v16  ;;  %v3642_v23 = vmul.f32 %v5179_v20, %v6547_v51 }
 0x1f5   : > { %vm3707_vm2 = vcmp.ge.f32.partialorder %v3675_v61, 0.0  ;;  %v3743_v26 = vmul.f32 %v6561_v60, %v3675_v61  ;;  %v3641_v27 = vmul.f32 %v5180_v14, %v6547_v51  ;;  %v4942_v29 = vpop.f32.mrb[18].mxu1  ;;  %v5142_v30 = vpop.f32.mrb[18].mxu0 }
 0x1f6   : > { %v3776_v31 = vsel %vm3708_vm1, %v3676_v16, %v3744_v18  ;;  %v3678_v32 = vadd.f32 %v6553_v56, %v3642_v23  ;;  %v5181_v34 = vadd.f32 %v5142_v30, %v4942_v29  ;;  %v1959_v35 = vpop.f32.mrb[19].mxu1  ;;  %v3520_v36 = vpop.f32.mrb[19].mxu0 }
 0x1f7   : > { %3809 = vst.msk [vmem:[%s6571_s10 + $0x78] sm:$0xff] %vm3793_vm3, %v3776_v31  ;;  %v3775_v38 = vsel %vm3707_vm2, %v3675_v61, %v3743_v26  ;;  %v3677_v39 = vadd.f32 %v6553_v56, %v3641_v27  ;;  %v5182_v40 = vadd.f32 %v3520_v36, %v1959_v35 }
 0x1f8   : > { %3808 = vst.msk [vmem:[%s6571_s10 + $0x70] sm:$0xff] %vm3793_vm3, %v3775_v38  ;;  %vm3710_vm4 = vcmp.ge.f32.partialorder %v3678_v32, 0.0  ;;  %v3746_v41 = vmul.f32 %v6561_v60, %v3678_v32  ;;  %v3644_v42 = vmul.f32 %v5181_v34, %v6547_v51 }
 0x1f9   : > { %vm3709_vm5 = vcmp.ge.f32.partialorder %v3677_v39, 0.0  ;;  %v3745_v43 = vmul.f32 %v6561_v60, %v3677_v39  ;;  %v3643_v52 = vmul.f32 %v5182_v40, %v6547_v51  ;;  %v4945_v53 = vpop.f32.mrb[20].mxu1  ;;  %v5145_v44 = vpop.f32.mrb[20].mxu0 }
 0x1fa   : > { %v3778_v54 = vsel %vm3710_vm4, %v3678_v32, %v3746_v41  ;;  %v3680_v58 = vadd.f32 %v6553_v56, %v3644_v42  ;;  %v5183_v59 = vadd.f32 %v5145_v44, %v4945_v53  ;;  %v1969_v62 = vpop.f32.mrb[21].mxu1  ;;  %v3530_v63 = vpop.f32.mrb[21].mxu0 }
 0x1fb   : > { %3811 = vst.msk [vmem:[%s6571_s10 + $0x88] sm:$0xff] %vm3793_vm3, %v3778_v54  ;;  %v3777_v45 = vsel %vm3709_vm5, %v3677_v39, %v3745_v43  ;;  %v3679_v0 = vadd.f32 %v6553_v56, %v3643_v52  ;;  %v5184_v2 = vadd.f32 %v3530_v63, %v1969_v62 }
 0x1fc   : > { %3810 = vst.msk [vmem:[%s6571_s10 + $0x80] sm:$0xff] %vm3793_vm3, %v3777_v45  ;;  %vm3712_vm6 = vcmp.ge.f32.partialorder %v3680_v58, 0.0  ;;  %v3748_v4 = vmul.f32 %v6561_v60, %v3680_v58  ;;  %v3646_v5 = vmul.f32 %v5183_v59, %v6547_v51 }
 0x1fd   : > { %vm3711_vm7 = vcmp.ge.f32.partialorder %v3679_v0, 0.0  ;;  %v3747_v6 = vmul.f32 %v6561_v60, %v3679_v0  ;;  %v3645_v46 = vmul.f32 %v5184_v2, %v6547_v51  ;;  %v4948_v7 = vpop.f32.mrb[22].mxu1  ;;  %v5148_v9 = vpop.f32.mrb[22].mxu0 }
 0x1fe   : > { %v3780_v10 = vsel %vm3712_vm6, %v3680_v58, %v3748_v4  ;;  %v3682_v55 = vadd.f32 %v6553_v56, %v3646_v5  ;;  %v5185_v57 = vadd.f32 %v5148_v9, %v4948_v7  ;;  %v1979_v47 = vpop.f32.mrb[23].mxu1  ;;  %v3540_v28 = vpop.f32.mrb[23].mxu0 }
 0x1ff   : > { %3813 = vst.msk [vmem:[%s6571_s10 + $0x98] sm:$0xff] %vm3793_vm3, %v3780_v10  ;;  %v3779_v24 = vsel %vm3711_vm7, %v3679_v0, %v3747_v6  ;;  %v3681_v25 = vadd.f32 %v6553_v56, %v3645_v46  ;;  %v5186_v8 = vadd.f32 %v3540_v28, %v1979_v47 }
 0x200   : > { %3812 = vst.msk [vmem:[%s6571_s10 + $0x90] sm:$0xff] %vm3793_vm3, %v3779_v24  ;;  %vm3714_vm8 = vcmp.ge.f32.partialorder %v3682_v55, 0.0  ;;  %v3750_v11 = vmul.f32 %v6561_v60, %v3682_v55  ;;  %v3648_v48 = vmul.f32 %v5185_v57, %v6547_v51 }
 0x201   : > { %vm3713_vm9 = vcmp.ge.f32.partialorder %v3681_v25, 0.0  ;;  %v3749_v13 = vmul.f32 %v6561_v60, %v3681_v25  ;;  %v3647_v15 = vmul.f32 %v5186_v8, %v6547_v51  ;;  %v4951_v17 = vpop.f32.mrb[24].mxu1  ;;  %v5151_v19 = vpop.f32.mrb[24].mxu0 }
 0x202   : > { %v3782_v21 = vsel %vm3714_vm8, %v3682_v55, %v3750_v11  ;;  %v3684_v49 = vadd.f32 %v6553_v56, %v3648_v48  ;;  %v5187_v22 = vadd.f32 %v5151_v19, %v4951_v17  ;;  %v1989_v37 = vpop.f32.mrb[25].mxu1  ;;  %v3550_v33 = vpop.f32.mrb[25].mxu0 }
 0x203   : > { %3815 = vst.msk [vmem:[%s6571_s10 + $0xa8] sm:$0xff] %vm3793_vm3, %v3782_v21  ;;  %v3781_v12 = vsel %vm3713_vm9, %v3681_v25, %v3749_v13  ;;  %v3683_v16 = vadd.f32 %v6553_v56, %v3647_v15  ;;  %v5188_v20 = vadd.f32 %v3550_v33, %v1989_v37 }
 0x204   : > { %3814 = vst.msk [vmem:[%s6571_s10 + $0xa0] sm:$0xff] %vm3793_vm3, %v3781_v12  ;;  %vm3716_vm10 = vcmp.ge.f32.partialorder %v3684_v49, 0.0  ;;  %v3752_v50 = vmul.f32 %v6561_v60, %v3684_v49  ;;  %v3650_v1 = vmul.f32 %v5187_v22, %v6547_v51 }
 0x205   : > { %vm3715_vm11 = vcmp.ge.f32.partialorder %v3683_v16, 0.0  ;;  %v3751_v3 = vmul.f32 %v6561_v60, %v3683_v16  ;;  %v3649_v61 = vmul.f32 %v5188_v20, %v6547_v51  ;;  %v4954_v14 = vpop.f32.mrb[26].mxu1  ;;  %v5154_v18 = vpop.f32.mrb[26].mxu0 }
 0x206   : > { %v3784_v23 = vsel %vm3716_vm10, %v3684_v49, %v3752_v50  ;;  %v3686_v26 = vadd.f32 %v6553_v56, %v3650_v1  ;;  %v5189_v27 = vadd.f32 %v5154_v18, %v4954_v14  ;;  %v1999_v29 = vpop.f32.mrb[27].mxu1  ;;  %v3560_v30 = vpop.f32.mrb[27].mxu0 }
 0x207   : > { %3817 = vst.msk [vmem:[%s6571_s10 + $0xb8] sm:$0xff] %vm3793_vm3, %v3784_v23  ;;  %v3783_v31 = vsel %vm3715_vm11, %v3683_v16, %v3751_v3  ;;  %v3685_v32 = vadd.f32 %v6553_v56, %v3649_v61  ;;  %v5190_v34 = vadd.f32 %v3560_v30, %v1999_v29 }
 0x208   : > { %3816 = vst.msk [vmem:[%s6571_s10 + $0xb0] sm:$0xff] %vm3793_vm3, %v3783_v31  ;;  %vm3718_vm12 = vcmp.ge.f32.partialorder %v3686_v26, 0.0  ;;  %v3754_v35 = vmul.f32 %v6561_v60, %v3686_v26  ;;  %v3652_v36 = vmul.f32 %v5189_v27, %v6547_v51 }
 0x209   : > { %vm3717_vm13 = vcmp.ge.f32.partialorder %v3685_v32, 0.0  ;;  %v3753_v38 = vmul.f32 %v6561_v60, %v3685_v32  ;;  %v3651_v39 = vmul.f32 %v5190_v34, %v6547_v51  ;;  %v4957_v40 = vpop.f32.mrb[28].mxu1  ;;  %v5157_v41 = vpop.f32.mrb[28].mxu0 }
 0x20a   : > { %v3786_v42 = vsel %vm3718_vm12, %v3686_v26, %v3754_v35  ;;  %v3688_v43 = vadd.f32 %v6553_v56, %v3652_v36  ;;  %v5191_v52 = vadd.f32 %v5157_v41, %v4957_v40  ;;  %v2009_v53 = vpop.f32.mrb[29].mxu1  ;;  %v3570_v44 = vpop.f32.mrb[29].mxu0 }
 0x20b   : > { %3819 = vst.msk [vmem:[%s6571_s10 + $0xc8] sm:$0xff] %vm3793_vm3, %v3786_v42  ;;  %v3785_v54 = vsel %vm3717_vm13, %v3685_v32, %v3753_v38  ;;  %v3687_v58 = vadd.f32 %v6553_v56, %v3651_v39  ;;  %v5192_v59 = vadd.f32 %v3570_v44, %v2009_v53 }
 0x20c   : > { %3818 = vst.msk [vmem:[%s6571_s10 + $0xc0] sm:$0xff] %vm3793_vm3, %v3785_v54  ;;  %vm3720_vm14 = vcmp.ge.f32.partialorder %v3688_v43, 0.0  ;;  %v3756_v62 = vmul.f32 %v6561_v60, %v3688_v43  ;;  %v3654_v63 = vmul.f32 %v5191_v52, %v6547_v51 }
 0x20d   : > { %vm3719_vm15 = vcmp.ge.f32.partialorder %v3687_v58, 0.0  ;;  %v3755_v45 = vmul.f32 %v6561_v60, %v3687_v58  ;;  %v3653_v0 = vmul.f32 %v5192_v59, %v6547_v51  ;;  %v4960_v2 = vpop.f32.mrb[30].mxu1  ;;  %v5160_v4 = vpop.f32.mrb[30].mxu0 }
 0x20e   : > { %v3788_v5 = vsel %vm3720_vm14, %v3688_v43, %v3756_v62  ;;  %v3690_v6 = vadd.f32 %v6553_v56, %v3654_v63  ;;  %v5193_v46 = vadd.f32 %v5160_v4, %v4960_v2  ;;  %v2019_v7 = vpop.f32.mrb[31].mxu1  ;;  %v3580_v9 = vpop.f32.mrb[31].mxu0 }
 0x20f   : > { %3821 = vst.msk [vmem:[%s6571_s10 + $0xd8] sm:$0xff] %vm3793_vm3, %v3788_v5  ;;  %v3787_v10 = vsel %vm3719_vm15, %v3687_v58, %v3755_v45  ;;  %v3689_v55 = vadd.f32 %v6553_v56, %v3653_v0  ;;  %v5194_v57 = vadd.f32 %v3580_v9, %v2019_v7 }
 0x210   : > { %3820 = vst.msk [vmem:[%s6571_s10 + $0xd0] sm:$0xff] %vm3793_vm3, %v3787_v10  ;;  %vm3722_vm0 = vcmp.ge.f32.partialorder %v3690_v6, 0.0  ;;  %v3758_v47 = vmul.f32 %v6561_v60, %v3690_v6  ;;  %v3656_v28 = vmul.f32 %v5193_v46, %v6547_v51 }
 0x211   : > { %vm3721_vm1 = vcmp.ge.f32.partialorder %v3689_v55, 0.0  ;;  %v3757_v24 = vmul.f32 %v6561_v60, %v3689_v55  ;;  %v3655_v25 = vmul.f32 %v5194_v57, %v6547_v51 }
 0x212   : > { %v3790_v8 = vsel %vm3722_vm0, %v3690_v6, %v3758_v47  ;;  %v3692_v11 = vadd.f32 %v6553_v56, %v3656_v28 }
 0x213   : > { %3823 = vst.msk [vmem:[%s6571_s10 + $0xe8] sm:$0xff] %vm3793_vm3, %v3790_v8  ;;  %v3789_v48 = vsel %vm3721_vm1, %v3689_v55, %v3757_v24  ;;  %v3691_v13 = vadd.f32 %v6553_v56, %v3655_v25 }
 0x214   : > { %3822 = vst.msk [vmem:[%s6571_s10 + $0xe0] sm:$0xff] %vm3793_vm3, %v3789_v48  ;;  %vm3724_vm2 = vcmp.ge.f32.partialorder %v3692_v11, 0.0  ;;  %v3760_v15 = vmul.f32 %v6561_v60, %v3692_v11 }
 0x215   : > { %vm3723_vm4 = vcmp.ge.f32.partialorder %v3691_v13, 0.0  ;;  %v3759_v51 = vmul.f32 %v6561_v60, %v3691_v13 }
 0x216   : > { %v3792_v17 = vsel %vm3724_vm2, %v3692_v11, %v3760_v15 }
 0x217   : > { %3825 = vst.msk [vmem:[%s6571_s10 + $0xf8] sm:$0xff] %vm3793_vm3, %v3792_v17  ;;  %v3791_v56 = vsel %vm3723_vm4, %v3691_v13, %v3759_v51 }
 0x218   : > { %3824 = vst.msk [vmem:[%s6571_s10 + $0xf0] sm:$0xff] %vm3793_vm3, %v3791_v56 }
 0x219   : > { %5474 = shalt.err (!%p5471_p3)
}
 0x21a   : > { %s5475_s29 = scalar_lea.hbm %s6733_s16, 4096  ;;  %s5479_s5 = scalar_lea.hbm %s6787_s3, 8192 }
 0x21b   : > { %p5476_p4 = scmp.ne.s32.totalorder %s6733_s16, %s5475_s29  ;;  %p5480_p9 = scmp.lt.u32.totalorder %s6733_s16, %s6787_s3 }
 0x21c   : > { %p5481_p10 = scmp.lt.u32.totalorder %s5479_s5, %s5475_s29  ;;  %p5483_p12 = scmp.lt.u32.totalorder %s5475_s29, %s6733_s16 }
 0x21d   : > { %p5477_p7 = pnand %p5476_p4, %p5586_p5 }
 0x21e   : > { %p5482_p11 = por %p5481_p10, %p5480_p9 }
 0x21f   : > { %p5478_p8 = pneg %p5477_p7 }
 0x220   : > { %p5484_p13 = por %p5483_p12, %p5482_p11 }
 0x222   : > { %p5485_p0 = pnand %p5484_p13, %p5478_p8 }
 0x224   : > { %5488 = shalt.err (!%p5485_p0)
}
 0x225   : > { %s5526_s8 = smov 128   ;;  %s5527_s9 = smov 8  }
 0x226   : > { %5420 = dma.vmem_to_hbm [thread:$0]  (%p5586_p5), %s6735_s17, 4096, %s6733_s16, %s6743_s24, %s5526_s8, %s5526_s8, %s5527_s9  }
 0x227 PF: > { %p5426_p1 = scmp.ge.s32.totalorder %s5523_s15, 2  ;;  %s3855_s10 = sand.u32 1, %s5511_s12  }
 0x228   : > { %s3856_s11 = scalar_lea.sflag [#allocation3], %s3855_s10 }
 0x229   : > { %p5423_p2 = pnand %p5426_p1, %p5590_p6 }
 0x22b   : > { %5506 = dma.done.wait (!%p5423_p2), %s3856_s11, 4096  }
 0x22c   : > { %5508 = vsyncadd (!%p5423_p2), %s3856_s11, 4294963200  ;;  %p13_p3 = scmp.ge.s32.totalorder %s5573_s18, 4   ;;  %s6899_s12 = smov %s5515_s13 }
 0x22d   : > { %s6900_s13 = smov %s5519_s14  ;;  %s6901_s14 = smov %s5584_s21 }
 0x22e   : > { %s6902_s15 = smov %s5573_s18  ;;  %15 = sbr.rel (!%p13_p3) target bundleno = 3 (0x3), region = 77 }
 0x235   :  { %3861 = vsyncpa [#allocation3], 1 }
 0x236   :  { %3863 = vsyncpa [#allocation3 + $0x1], 1 }

</bundles_post_ra>
